<compile_context>
chip_gen: v6e
topology: v6e:2x2x1
jax: 0.10.0
libtpu: 0.0.40
codegen_flags: <defaults>
</compile_context>

<pallas_src>
from functools import partial

import jax
import jax.numpy as jnp
import numpy as np
from jax.experimental import pallas as pl
from jax.experimental.pallas import tpu as pltpu


# ----------------------------- Pallas kernel --------------------------------

def lstm_decoder_kernel(emb_ref, h0_ref, mask_ref,
                        w0_ref, b0_ref, w1_ref, b1_ref,
                        fc_w_ref, fc_b_ref,
                        logits_ref, outs_ref):
    T, BT, _E = emb_ref.shape
    H = h0_ref.shape[2]

    # Hoist parameters (reused every timestep).  Gate order is [i, f, o, g].
    w0 = w0_ref[...]                                       # (E+H, 4H)
    w1 = w1_ref[...]                                       # (2H, 4H)
    fc_w = fc_w_ref[...]                                   # (H, Vp)
    fc_b = fc_b_ref[...]                                   # (1, Vp)
    # Pre-broadcast biases once (JAX does not CSE broadcast_in_dim in loops).
    b0 = jnp.broadcast_to(b0_ref[...], (BT, 4 * H))
    b1 = jnp.broadcast_to(b1_ref[...], (BT, 4 * H))

    h1 = h0_ref[0]                                         # (BT, H)
    h2 = h0_ref[1]                                         # (BT, H)
    c1 = jnp.zeros((BT, H), jnp.float32)                   # init_cell_state
    c2 = jnp.zeros((BT, H), jnp.float32)

    def cell(xh, c, w, b):
        # Single fused MXU dot for input + recurrent contributions.
        gates = jnp.dot(xh, w, preferred_element_type=jnp.float32) + b
        sig = jax.nn.sigmoid(gates[:, :3 * H])             # i, f, o together
        g = jnp.tanh(gates[:, 3 * H:])
        i = sig[:, :H]
        f = sig[:, H:2 * H]
        o = sig[:, 2 * H:3 * H]
        c_new = f * c + i * g
        h_new = o * jnp.tanh(c_new)
        return h_new, c_new

    # Static unroll: T is small and fixed at trace time.
    for t in range(T):
        x_t = emb_ref[t]                                   # (BT, E)
        h1, c1 = cell(jnp.concatenate([x_t, h1], axis=-1), c1, w0, b0)
        h2, c2 = cell(jnp.concatenate([h1, h2], axis=-1), c2, w1, b1)
        outs_ref[pl.ds(t * BT, BT), :] = h2                # raw h2 -> scratch

    # Masking + final Linear hoisted out of the recurrence:
    # one bulk dot and one lane-dense (Vp multiple of 128) store.
    outs = outs_ref[...] * mask_ref[0]                     # (T*BT, H)
    logits_ref[0] = (jnp.dot(outs, fc_w, preferred_element_type=jnp.float32)
                     + fc_b)


# ------------------------------- Wrapper -------------------------------------

def _reorder_gate_rows(w):
    """Reorder PyTorch gate blocks [i, f, g, o] -> [i, f, o, g] along axis 0."""
    i, f, g, o = jnp.split(w, 4, axis=0)
    return jnp.concatenate([i, f, o, g], axis=0)


@partial(jax.jit, static_argnames=("t_out",))
def lstm_decoder_forward(x, h0, seq_lengths, params, *, t_out):
    """x: (B, T) int32 token ids; h0: (2, B, H); seq_lengths: (B,) int32 (desc).

    t_out is static: max(seq_lengths) - 1 (== PyTorch pad_packed output length).
    Returns logits of shape (B, t_out, V), batch_first.
    """
    B = x.shape[0]
    E = params["emb"].shape[1]
    H = params["w_hh0"].shape[1]
    V = params["fc_w"].shape[0]

    BT = 8                                   # f32 sublane count per batch tile
    B_pad = ((B + BT - 1) // BT) * BT
    num_bt = B_pad // BT
    Vp = ((V + 127) // 128) * 128            # lane-dense output width

    # ---- glue: embedding gather, time-major layout, batch padding ----------
    emb = jnp.take(params["emb"], x, axis=0).astype(jnp.float32)     # (B,T,E)
    emb = jnp.transpose(emb[:, :t_out, :], (1, 0, 2))                # (T,B,E)
    emb = jnp.pad(emb, ((0, 0), (0, B_pad - B), (0, 0)))             # (T,Bp,E)
    h0_p = jnp.pad(h0.astype(jnp.float32),
                   ((0, 0), (0, B_pad - B), (0, 0)))                 # (2,Bp,H)

    # Validity mask (pad_packed semantics): position t valid iff len-1 > t.
    lengths = seq_lengths.astype(jnp.int32) - 1                      # (B,)
    lengths_p = jnp.zeros((B_pad,), jnp.int32).at[:B].set(lengths)
    valid = (lengths_p[None, :] > jnp.arange(t_out)[:, None])        # (T,Bp)
    mask = (valid.astype(jnp.float32)
            .reshape(t_out, num_bt, BT)
            .transpose(1, 0, 2)
            .reshape(num_bt, t_out * BT, 1))                         # (nb,T*BT,1)

    # ---- weight prep: fuse [W_ih; W_hh], reorder gates, pad fc to 128 ------
    w0 = jnp.concatenate([_reorder_gate_rows(params["w_ih0"]),
                          _reorder_gate_rows(params["w_hh0"])], axis=1).T  # (E+H,4H)
    b0 = _reorder_gate_rows((params["b_ih0"] + params["b_hh0"])[:, None]).T  # (1,4H)
    w1 = jnp.concatenate([_reorder_gate_rows(params["w_ih1"]),
                          _reorder_gate_rows(params["w_hh1"])], axis=1).T  # (2H,4H)
    b1 = _reorder_gate_rows((params["b_ih1"] + params["b_hh1"])[:, None]).T  # (1,4H)
    fc_w = jnp.zeros((H, Vp), jnp.float32).at[:, :V].set(params["fc_w"].T)
    fc_b = jnp.zeros((1, Vp), jnp.float32).at[0, :V].set(params["fc_b"])

    T = t_out
    grid = (num_bt,)
    in_specs = [
        pl.BlockSpec((T, BT, E), lambda b: (0, b, 0)),        # emb
        pl.BlockSpec((2, BT, H), lambda b: (0, b, 0)),        # h0
        pl.BlockSpec((1, T * BT, 1), lambda b: (b, 0, 0)),    # mask
        pl.BlockSpec((E + H, 4 * H), lambda b: (0, 0)),       # w0
        pl.BlockSpec((1, 4 * H), lambda b: (0, 0)),           # b0
        pl.BlockSpec((2 * H, 4 * H), lambda b: (0, 0)),       # w1
        pl.BlockSpec((1, 4 * H), lambda b: (0, 0)),           # b1
        pl.BlockSpec((H, Vp), lambda b: (0, 0)),              # fc_w
        pl.BlockSpec((1, Vp), lambda b: (0, 0)),              # fc_b
    ]
    out_specs = pl.BlockSpec((1, T * BT, Vp), lambda b: (b, 0, 0))

    logits_p = pl.pallas_call(
        lstm_decoder_kernel,
        out_shape=jax.ShapeDtypeStruct((num_bt, T * BT, Vp), jnp.float32),
        grid=grid,
        in_specs=in_specs,
        out_specs=out_specs,
        scratch_shapes=[pltpu.VMEM((T * BT, H), jnp.float32)],
        compiler_params=pltpu.CompilerParams(
            dimension_semantics=("parallel",)),
    )(emb, h0_p, mask, w0, b0, w1, b1, fc_w, fc_b)

    # (num_bt, T*BT, Vp) -> (B, T, V) batch_first, drop padding.
    logits = (logits_p.reshape(num_bt, T, BT, Vp)
              .transpose(0, 2, 1, 3)
              .reshape(B_pad, T, Vp))[:B, :, :V]
    return logits


# --------------------------- Pure-JAX reference ------------------------------

def lstm_decoder_reference(x, h0, seq_lengths, p, t_out):
    lengths = seq_lengths.astype(jnp.int32) - 1
    emb = jnp.take(p["emb"], x, axis=0)[:, :t_out, :].astype(jnp.float32)

    def cell(xt, h, c, w_ih, w_hh, b_ih, b_hh):
        g = xt @ w_ih.T + b_ih + h @ w_hh.T + b_hh
        i, f, gg, o = jnp.split(g, 4, axis=-1)
        c = jax.nn.sigmoid(f) * c + jax.nn.sigmoid(i) * jnp.tanh(gg)
        h = jax.nn.sigmoid(o) * jnp.tanh(c)
        return h, c

    h1, h2 = h0[0], h0[1]
    c1 = jnp.zeros_like(h1)
    c2 = jnp.zeros_like(h2)
    outs = []
    for t in range(t_out):
        h1, c1 = cell(emb[:, t], h1, c1, p["w_ih0"], p["w_hh0"], p["b_ih0"], p["b_hh0"])
        h2, c2 = cell(h1, h2, c2, p["w_ih1"], p["w_hh1"], p["b_ih1"], p["b_hh1"])
        outs.append(jnp.where((lengths > t)[:, None], h2, 0.0))
    out = jnp.stack(outs, axis=1)                           # (B, T_out, H)
    return out @ p["fc_w"].T + p["fc_b"]


# --------------------------------- Main ---------------------------------------

if __name__ == "__main__":
    vocab_size = 32
    embedding_dim = 16
    num_hidden = 32
    num_layers = 2
    B, T = 4, 8

    key = jax.random.PRNGKey(0)
    ks = jax.random.split(key, 14)

    def unif(k, shape, scale):
        return jax.random.uniform(k, shape, jnp.float32, -scale, scale)

    kH = 1.0 / np.sqrt(num_hidden)
    params = {
        "emb":   jax.random.normal(ks[0], (vocab_size, embedding_dim), jnp.float32),
        # LSTM layer 0
        "w_ih0": unif(ks[1], (4 * num_hidden, embedding_dim), kH),
        "w_hh0": unif(ks[2], (4 * num_hidden, num_hidden), kH),
        "b_ih0": unif(ks[3], (4 * num_hidden,), kH),
        "b_hh0": unif(ks[4], (4 * num_hidden,), kH),
        # LSTM layer 1
        "w_ih1": unif(ks[5], (4 * num_hidden, num_hidden), kH),
        "w_hh1": unif(ks[6], (4 * num_hidden, num_hidden), kH),
        "b_ih1": unif(ks[7], (4 * num_hidden,), kH),
        "b_hh1": unif(ks[8], (4 * num_hidden,), kH),
        # fc
        "fc_w":  unif(ks[9], (vocab_size, num_hidden), kH),
        "fc_b":  unif(ks[10], (vocab_size,), kH),
    }

    x = jax.random.randint(ks[11], (B, T), 0, vocab_size, dtype=jnp.int32)
    h0 = 0.1 * jax.random.normal(ks[12], (num_layers, B, num_hidden), jnp.float32)
    # pack_padded_sequence (enforce_sorted=True) requires descending lengths.
    seq_lengths_list = [8, 7, 6, 5]
    seq_lengths = jnp.array(seq_lengths_list, dtype=jnp.int32)
    t_out = max(seq_lengths_list) - 1        # static, no device->host sync

    logits = lstm_decoder_forward(x, h0, seq_lengths, params, t_out=t_out)
    logits = jax.block_until_ready(logits)

    ref = lstm_decoder_reference(x, h0, seq_lengths, params, t_out)
    np.testing.assert_allclose(np.asarray(logits), np.asarray(ref),
                               rtol=1e-4, atol=1e-4)

    assert logits.shape == (B, t_out, vocab_size)
    print("KERNEL_OK")
</pallas_src>

<mosaic_0001>
module attributes {stable_mosaic.version = 11 : i64} {
  func.func @lstm_decoder_kernel(%arg0: i32, %arg1: memref<7x8x16xf32, #tpu.memory_space<vmem>>, %arg2: memref<2x8x32xf32, #tpu.memory_space<vmem>>, %arg3: memref<1x56x1xf32, #tpu.memory_space<vmem>>, %arg4: memref<48x128xf32, #tpu.memory_space<vmem>>, %arg5: memref<1x128xf32, #tpu.memory_space<vmem>>, %arg6: memref<64x128xf32, #tpu.memory_space<vmem>>, %arg7: memref<1x128xf32, #tpu.memory_space<vmem>>, %arg8: memref<32x128xf32, #tpu.memory_space<vmem>>, %arg9: memref<1x128xf32, #tpu.memory_space<vmem>>, %arg10: memref<1x56x128xf32, #tpu.memory_space<vmem>>, %arg11: memref<56x32xf32, #tpu.memory_space<vmem>>) attributes {dimension_semantics = [#tpu.dimension_semantics<parallel>], iteration_bounds = array<i64: 1>, scalar_prefetch = 0 : i64, scratch_operands = 1 : i64, tpu.core_type = #tpu.core_type<tc>, window_params = [{transform_indices = @transform_0, window_bounds = array<i64: 7, 8, 16>}, {transform_indices = @transform_1, window_bounds = array<i64: 2, 8, 32>}, {transform_indices = @transform_2, window_bounds = array<i64: 1, 56, 1>}, {pipeline_mode = #tpu.pipeline_mode<synchronous>, transform_indices = @transform_3, window_bounds = array<i64: 48, 128>}, {pipeline_mode = #tpu.pipeline_mode<synchronous>, transform_indices = @transform_4, window_bounds = array<i64: 1, 128>}, {pipeline_mode = #tpu.pipeline_mode<synchronous>, transform_indices = @transform_5, window_bounds = array<i64: 64, 128>}, {pipeline_mode = #tpu.pipeline_mode<synchronous>, transform_indices = @transform_6, window_bounds = array<i64: 1, 128>}, {pipeline_mode = #tpu.pipeline_mode<synchronous>, transform_indices = @transform_7, window_bounds = array<i64: 32, 128>}, {pipeline_mode = #tpu.pipeline_mode<synchronous>, transform_indices = @transform_8, window_bounds = array<i64: 1, 128>}, {transform_indices = @transform_9, window_bounds = array<i64: 1, 56, 128>}]} {
    %c0 = arith.constant 0 : index
    %c0_0 = arith.constant 0 : index
    %0 = vector.load %arg4[%c0, %c0_0] : memref<48x128xf32, #tpu.memory_space<vmem>>, vector<48x128xf32>
    %c0_1 = arith.constant 0 : index
    %c0_2 = arith.constant 0 : index
    %1 = vector.load %arg6[%c0_1, %c0_2] : memref<64x128xf32, #tpu.memory_space<vmem>>, vector<64x128xf32>
    %c0_3 = arith.constant 0 : index
    %c0_4 = arith.constant 0 : index
    %2 = vector.load %arg8[%c0_3, %c0_4] : memref<32x128xf32, #tpu.memory_space<vmem>>, vector<32x128xf32>
    %c0_5 = arith.constant 0 : index
    %c0_6 = arith.constant 0 : index
    %3 = vector.load %arg9[%c0_5, %c0_6] : memref<1x128xf32, #tpu.memory_space<vmem>>, vector<1x128xf32>
    %c0_7 = arith.constant 0 : index
    %c0_8 = arith.constant 0 : index
    %4 = vector.load %arg5[%c0_7, %c0_8] : memref<1x128xf32, #tpu.memory_space<vmem>>, vector<1x128xf32>
    %5 = vector.shape_cast %4 : vector<1x128xf32> to vector<1x128xf32>
    %6 = vector.broadcast %5 : vector<1x128xf32> to vector<8x128xf32>
    %c0_9 = arith.constant 0 : index
    %c0_10 = arith.constant 0 : index
    %7 = vector.load %arg7[%c0_9, %c0_10] : memref<1x128xf32, #tpu.memory_space<vmem>>, vector<1x128xf32>
    %8 = vector.shape_cast %7 : vector<1x128xf32> to vector<1x128xf32>
    %9 = vector.broadcast %8 : vector<1x128xf32> to vector<8x128xf32>
    %c0_11 = arith.constant 0 : index
    %c0_12 = arith.constant 0 : index
    %c0_13 = arith.constant 0 : index
    %10 = vector.load %arg2[%c0_11, %c0_12, %c0_13] : memref<2x8x32xf32, #tpu.memory_space<vmem>>, vector<1x8x32xf32>
    %11 = vector.shape_cast %10 : vector<1x8x32xf32> to vector<8x32xf32>
    %c1 = arith.constant 1 : index
    %c0_14 = arith.constant 0 : index
    %c0_15 = arith.constant 0 : index
    %12 = vector.load %arg2[%c1, %c0_14, %c0_15] : memref<2x8x32xf32, #tpu.memory_space<vmem>>, vector<1x8x32xf32>
    %13 = vector.shape_cast %12 : vector<1x8x32xf32> to vector<8x32xf32>
    %cst = arith.constant 0.000000e+00 : f32
    %14 = vector.broadcast %cst : f32 to vector<8x32xf32>
    %cst_16 = arith.constant 0.000000e+00 : f32
    %15 = vector.broadcast %cst_16 : f32 to vector<8x32xf32>
    %c0_17 = arith.constant 0 : index
    %c0_18 = arith.constant 0 : index
    %c0_19 = arith.constant 0 : index
    %16 = vector.load %arg1[%c0_17, %c0_18, %c0_19] : memref<7x8x16xf32, #tpu.memory_space<vmem>>, vector<1x8x16xf32>
    %17 = vector.shape_cast %16 : vector<1x8x16xf32> to vector<8x16xf32>
    %18 = tpu.concatenate %17, %11 in 1 : vector<8x16xf32>, vector<8x32xf32> -> vector<8x48xf32>
    %cst_20 = arith.constant dense<0.000000e+00> : vector<8x128xf32>
    %19 = tpu.matmul %18, %0, %cst_20 {dimension_numbers = #tpu.dot_dimension_numbers<[1], [0], [0], [1], [0, 0, 1, 1], [], []>} : vector<8x48xf32>, vector<48x128xf32>, vector<8x128xf32> -> vector<8x128xf32>
    %20 = arith.addf %19, %6 : vector<8x128xf32>
    %21 = vector.extract_strided_slice %20 {offsets = [0, 0], sizes = [8, 96], strides = [1, 1]} : vector<8x128xf32> to vector<8x96xf32>
    %22 = arith.negf %21 : vector<8x96xf32>
    %23 = math.exp %22 : vector<8x96xf32>
    %cst_21 = arith.constant 1.000000e+00 : f32
    %24 = vector.broadcast %cst_21 : f32 to vector<8x96xf32>
    %25 = arith.addf %24, %23 : vector<8x96xf32>
    %26 = arith.divf %24, %25 : vector<8x96xf32>
    %27 = vector.extract_strided_slice %20 {offsets = [0, 96], sizes = [8, 32], strides = [1, 1]} : vector<8x128xf32> to vector<8x32xf32>
    %28 = math.tanh %27 : vector<8x32xf32>
    %29 = vector.extract_strided_slice %26 {offsets = [0, 0], sizes = [8, 32], strides = [1, 1]} : vector<8x96xf32> to vector<8x32xf32>
    %30 = vector.extract_strided_slice %26 {offsets = [0, 32], sizes = [8, 32], strides = [1, 1]} : vector<8x96xf32> to vector<8x32xf32>
    %31 = vector.extract_strided_slice %26 {offsets = [0, 64], sizes = [8, 32], strides = [1, 1]} : vector<8x96xf32> to vector<8x32xf32>
    %32 = arith.mulf %30, %14 : vector<8x32xf32>
    %33 = arith.mulf %29, %28 : vector<8x32xf32>
    %34 = arith.addf %32, %33 : vector<8x32xf32>
    %35 = math.tanh %34 : vector<8x32xf32>
    %36 = arith.mulf %31, %35 : vector<8x32xf32>
    %37 = tpu.concatenate %36, %13 in 1 : vector<8x32xf32>, vector<8x32xf32> -> vector<8x64xf32>
    %cst_22 = arith.constant dense<0.000000e+00> : vector<8x128xf32>
    %38 = tpu.matmul %37, %1, %cst_22 {dimension_numbers = #tpu.dot_dimension_numbers<[1], [0], [0], [1], [0, 0, 1, 1], [], []>} : vector<8x64xf32>, vector<64x128xf32>, vector<8x128xf32> -> vector<8x128xf32>
    %39 = arith.addf %38, %9 : vector<8x128xf32>
    %40 = vector.extract_strided_slice %39 {offsets = [0, 0], sizes = [8, 96], strides = [1, 1]} : vector<8x128xf32> to vector<8x96xf32>
    %41 = arith.negf %40 : vector<8x96xf32>
    %42 = math.exp %41 : vector<8x96xf32>
    %cst_23 = arith.constant 1.000000e+00 : f32
    %43 = vector.broadcast %cst_23 : f32 to vector<8x96xf32>
    %44 = arith.addf %43, %42 : vector<8x96xf32>
    %45 = arith.divf %43, %44 : vector<8x96xf32>
    %46 = vector.extract_strided_slice %39 {offsets = [0, 96], sizes = [8, 32], strides = [1, 1]} : vector<8x128xf32> to vector<8x32xf32>
    %47 = math.tanh %46 : vector<8x32xf32>
    %48 = vector.extract_strided_slice %45 {offsets = [0, 0], sizes = [8, 32], strides = [1, 1]} : vector<8x96xf32> to vector<8x32xf32>
    %49 = vector.extract_strided_slice %45 {offsets = [0, 32], sizes = [8, 32], strides = [1, 1]} : vector<8x96xf32> to vector<8x32xf32>
    %50 = vector.extract_strided_slice %45 {offsets = [0, 64], sizes = [8, 32], strides = [1, 1]} : vector<8x96xf32> to vector<8x32xf32>
    %51 = arith.mulf %49, %15 : vector<8x32xf32>
    %52 = arith.mulf %48, %47 : vector<8x32xf32>
    %53 = arith.addf %51, %52 : vector<8x32xf32>
    %54 = math.tanh %53 : vector<8x32xf32>
    %55 = arith.mulf %50, %54 : vector<8x32xf32>
    %c0_24 = arith.constant 0 : index
    %c0_25 = arith.constant 0 : index
    %56 = vector.load %arg11[%c0_24, %c0_25] : memref<56x32xf32, #tpu.memory_space<vmem>>, vector<8x32xf32>
    tpu.vector_store %arg11[%c0_24, %c0_25], %55 {strides = array<i32>} : memref<56x32xf32, #tpu.memory_space<vmem>>, vector<8x32xf32>,
    %c1_26 = arith.constant 1 : index
    %c0_27 = arith.constant 0 : index
    %c0_28 = arith.constant 0 : index
    %57 = vector.load %arg1[%c1_26, %c0_27, %c0_28] : memref<7x8x16xf32, #tpu.memory_space<vmem>>, vector<1x8x16xf32>
    %58 = vector.shape_cast %57 : vector<1x8x16xf32> to vector<8x16xf32>
    %59 = tpu.concatenate %58, %36 in 1 : vector<8x16xf32>, vector<8x32xf32> -> vector<8x48xf32>
    %cst_29 = arith.constant dense<0.000000e+00> : vector<8x128xf32>
    %60 = tpu.matmul %59, %0, %cst_29 {dimension_numbers = #tpu.dot_dimension_numbers<[1], [0], [0], [1], [0, 0, 1, 1], [], []>} : vector<8x48xf32>, vector<48x128xf32>, vector<8x128xf32> -> vector<8x128xf32>
    %61 = arith.addf %60, %6 : vector<8x128xf32>
    %62 = vector.extract_strided_slice %61 {offsets = [0, 0], sizes = [8, 96], strides = [1, 1]} : vector<8x128xf32> to vector<8x96xf32>
    %63 = arith.negf %62 : vector<8x96xf32>
    %64 = math.exp %63 : vector<8x96xf32>
    %cst_30 = arith.constant 1.000000e+00 : f32
    %65 = vector.broadcast %cst_30 : f32 to vector<8x96xf32>
    %66 = arith.addf %65, %64 : vector<8x96xf32>
    %67 = arith.divf %65, %66 : vector<8x96xf32>
    %68 = vector.extract_strided_slice %61 {offsets = [0, 96], sizes = [8, 32], strides = [1, 1]} : vector<8x128xf32> to vector<8x32xf32>
    %69 = math.tanh %68 : vector<8x32xf32>
    %70 = vector.extract_strided_slice %67 {offsets = [0, 0], sizes = [8, 32], strides = [1, 1]} : vector<8x96xf32> to vector<8x32xf32>
    %71 = vector.extract_strided_slice %67 {offsets = [0, 32], sizes = [8, 32], strides = [1, 1]} : vector<8x96xf32> to vector<8x32xf32>
    %72 = vector.extract_strided_slice %67 {offsets = [0, 64], sizes = [8, 32], strides = [1, 1]} : vector<8x96xf32> to vector<8x32xf32>
    %73 = arith.mulf %71, %34 : vector<8x32xf32>
    %74 = arith.mulf %70, %69 : vector<8x32xf32>
    %75 = arith.addf %73, %74 : vector<8x32xf32>
    %76 = math.tanh %75 : vector<8x32xf32>
    %77 = arith.mulf %72, %76 : vector<8x32xf32>
    %78 = tpu.concatenate %77, %55 in 1 : vector<8x32xf32>, vector<8x32xf32> -> vector<8x64xf32>
    %cst_31 = arith.constant dense<0.000000e+00> : vector<8x128xf32>
    %79 = tpu.matmul %78, %1, %cst_31 {dimension_numbers = #tpu.dot_dimension_numbers<[1], [0], [0], [1], [0, 0, 1, 1], [], []>} : vector<8x64xf32>, vector<64x128xf32>, vector<8x128xf32> -> vector<8x128xf32>
    %80 = arith.addf %79, %9 : vector<8x128xf32>
    %81 = vector.extract_strided_slice %80 {offsets = [0, 0], sizes = [8, 96], strides = [1, 1]} : vector<8x128xf32> to vector<8x96xf32>
    %82 = arith.negf %81 : vector<8x96xf32>
    %83 = math.exp %82 : vector<8x96xf32>
    %cst_32 = arith.constant 1.000000e+00 : f32
    %84 = vector.broadcast %cst_32 : f32 to vector<8x96xf32>
    %85 = arith.addf %84, %83 : vector<8x96xf32>
    %86 = arith.divf %84, %85 : vector<8x96xf32>
    %87 = vector.extract_strided_slice %80 {offsets = [0, 96], sizes = [8, 32], strides = [1, 1]} : vector<8x128xf32> to vector<8x32xf32>
    %88 = math.tanh %87 : vector<8x32xf32>
    %89 = vector.extract_strided_slice %86 {offsets = [0, 0], sizes = [8, 32], strides = [1, 1]} : vector<8x96xf32> to vector<8x32xf32>
    %90 = vector.extract_strided_slice %86 {offsets = [0, 32], sizes = [8, 32], strides = [1, 1]} : vector<8x96xf32> to vector<8x32xf32>
    %91 = vector.extract_strided_slice %86 {offsets = [0, 64], sizes = [8, 32], strides = [1, 1]} : vector<8x96xf32> to vector<8x32xf32>
    %92 = arith.mulf %90, %53 : vector<8x32xf32>
    %93 = arith.mulf %89, %88 : vector<8x32xf32>
    %94 = arith.addf %92, %93 : vector<8x32xf32>
    %95 = math.tanh %94 : vector<8x32xf32>
    %96 = arith.mulf %91, %95 : vector<8x32xf32>
    %c8 = arith.constant 8 : index
    %c0_33 = arith.constant 0 : index
    %97 = vector.load %arg11[%c8, %c0_33] : memref<56x32xf32, #tpu.memory_space<vmem>>, vector<8x32xf32>
    tpu.vector_store %arg11[%c8, %c0_33], %96 {strides = array<i32>} : memref<56x32xf32, #tpu.memory_space<vmem>>, vector<8x32xf32>,
    %c2 = arith.constant 2 : index
    %c0_34 = arith.constant 0 : index
    %c0_35 = arith.constant 0 : index
    %98 = vector.load %arg1[%c2, %c0_34, %c0_35] : memref<7x8x16xf32, #tpu.memory_space<vmem>>, vector<1x8x16xf32>
    %99 = vector.shape_cast %98 : vector<1x8x16xf32> to vector<8x16xf32>
    %100 = tpu.concatenate %99, %77 in 1 : vector<8x16xf32>, vector<8x32xf32> -> vector<8x48xf32>
    %cst_36 = arith.constant dense<0.000000e+00> : vector<8x128xf32>
    %101 = tpu.matmul %100, %0, %cst_36 {dimension_numbers = #tpu.dot_dimension_numbers<[1], [0], [0], [1], [0, 0, 1, 1], [], []>} : vector<8x48xf32>, vector<48x128xf32>, vector<8x128xf32> -> vector<8x128xf32>
    %102 = arith.addf %101, %6 : vector<8x128xf32>
    %103 = vector.extract_strided_slice %102 {offsets = [0, 0], sizes = [8, 96], strides = [1, 1]} : vector<8x128xf32> to vector<8x96xf32>
    %104 = arith.negf %103 : vector<8x96xf32>
    %105 = math.exp %104 : vector<8x96xf32>
    %cst_37 = arith.constant 1.000000e+00 : f32
    %106 = vector.broadcast %cst_37 : f32 to vector<8x96xf32>
    %107 = arith.addf %106, %105 : vector<8x96xf32>
    %108 = arith.divf %106, %107 : vector<8x96xf32>
    %109 = vector.extract_strided_slice %102 {offsets = [0, 96], sizes = [8, 32], strides = [1, 1]} : vector<8x128xf32> to vector<8x32xf32>
    %110 = math.tanh %109 : vector<8x32xf32>
    %111 = vector.extract_strided_slice %108 {offsets = [0, 0], sizes = [8, 32], strides = [1, 1]} : vector<8x96xf32> to vector<8x32xf32>
    %112 = vector.extract_strided_slice %108 {offsets = [0, 32], sizes = [8, 32], strides = [1, 1]} : vector<8x96xf32> to vector<8x32xf32>
    %113 = vector.extract_strided_slice %108 {offsets = [0, 64], sizes = [8, 32], strides = [1, 1]} : vector<8x96xf32> to vector<8x32xf32>
    %114 = arith.mulf %112, %75 : vector<8x32xf32>
    %115 = arith.mulf %111, %110 : vector<8x32xf32>
    %116 = arith.addf %114, %115 : vector<8x32xf32>
    %117 = math.tanh %116 : vector<8x32xf32>
    %118 = arith.mulf %113, %117 : vector<8x32xf32>
    %119 = tpu.concatenate %118, %96 in 1 : vector<8x32xf32>, vector<8x32xf32> -> vector<8x64xf32>
    %cst_38 = arith.constant dense<0.000000e+00> : vector<8x128xf32>
    %120 = tpu.matmul %119, %1, %cst_38 {dimension_numbers = #tpu.dot_dimension_numbers<[1], [0], [0], [1], [0, 0, 1, 1], [], []>} : vector<8x64xf32>, vector<64x128xf32>, vector<8x128xf32> -> vector<8x128xf32>
    %121 = arith.addf %120, %9 : vector<8x128xf32>
    %122 = vector.extract_strided_slice %121 {offsets = [0, 0], sizes = [8, 96], strides = [1, 1]} : vector<8x128xf32> to vector<8x96xf32>
    %123 = arith.negf %122 : vector<8x96xf32>
    %124 = math.exp %123 : vector<8x96xf32>
    %cst_39 = arith.constant 1.000000e+00 : f32
    %125 = vector.broadcast %cst_39 : f32 to vector<8x96xf32>
    %126 = arith.addf %125, %124 : vector<8x96xf32>
    %127 = arith.divf %125, %126 : vector<8x96xf32>
    %128 = vector.extract_strided_slice %121 {offsets = [0, 96], sizes = [8, 32], strides = [1, 1]} : vector<8x128xf32> to vector<8x32xf32>
    %129 = math.tanh %128 : vector<8x32xf32>
    %130 = vector.extract_strided_slice %127 {offsets = [0, 0], sizes = [8, 32], strides = [1, 1]} : vector<8x96xf32> to vector<8x32xf32>
    %131 = vector.extract_strided_slice %127 {offsets = [0, 32], sizes = [8, 32], strides = [1, 1]} : vector<8x96xf32> to vector<8x32xf32>
    %132 = vector.extract_strided_slice %127 {offsets = [0, 64], sizes = [8, 32], strides = [1, 1]} : vector<8x96xf32> to vector<8x32xf32>
    %133 = arith.mulf %131, %94 : vector<8x32xf32>
    %134 = arith.mulf %130, %129 : vector<8x32xf32>
    %135 = arith.addf %133, %134 : vector<8x32xf32>
    %136 = math.tanh %135 : vector<8x32xf32>
    %137 = arith.mulf %132, %136 : vector<8x32xf32>
    %c16 = arith.constant 16 : index
    %c0_40 = arith.constant 0 : index
    %138 = vector.load %arg11[%c16, %c0_40] : memref<56x32xf32, #tpu.memory_space<vmem>>, vector<8x32xf32>
    tpu.vector_store %arg11[%c16, %c0_40], %137 {strides = array<i32>} : memref<56x32xf32, #tpu.memory_space<vmem>>, vector<8x32xf32>,
    %c3 = arith.constant 3 : index
    %c0_41 = arith.constant 0 : index
    %c0_42 = arith.constant 0 : index
    %139 = vector.load %arg1[%c3, %c0_41, %c0_42] : memref<7x8x16xf32, #tpu.memory_space<vmem>>, vector<1x8x16xf32>
    %140 = vector.shape_cast %139 : vector<1x8x16xf32> to vector<8x16xf32>
    %141 = tpu.concatenate %140, %118 in 1 : vector<8x16xf32>, vector<8x32xf32> -> vector<8x48xf32>
    %cst_43 = arith.constant dense<0.000000e+00> : vector<8x128xf32>
    %142 = tpu.matmul %141, %0, %cst_43 {dimension_numbers = #tpu.dot_dimension_numbers<[1], [0], [0], [1], [0, 0, 1, 1], [], []>} : vector<8x48xf32>, vector<48x128xf32>, vector<8x128xf32> -> vector<8x128xf32>
    %143 = arith.addf %142, %6 : vector<8x128xf32>
    %144 = vector.extract_strided_slice %143 {offsets = [0, 0], sizes = [8, 96], strides = [1, 1]} : vector<8x128xf32> to vector<8x96xf32>
    %145 = arith.negf %144 : vector<8x96xf32>
    %146 = math.exp %145 : vector<8x96xf32>
    %cst_44 = arith.constant 1.000000e+00 : f32
    %147 = vector.broadcast %cst_44 : f32 to vector<8x96xf32>
    %148 = arith.addf %147, %146 : vector<8x96xf32>
    %149 = arith.divf %147, %148 : vector<8x96xf32>
    %150 = vector.extract_strided_slice %143 {offsets = [0, 96], sizes = [8, 32], strides = [1, 1]} : vector<8x128xf32> to vector<8x32xf32>
    %151 = math.tanh %150 : vector<8x32xf32>
    %152 = vector.extract_strided_slice %149 {offsets = [0, 0], sizes = [8, 32], strides = [1, 1]} : vector<8x96xf32> to vector<8x32xf32>
    %153 = vector.extract_strided_slice %149 {offsets = [0, 32], sizes = [8, 32], strides = [1, 1]} : vector<8x96xf32> to vector<8x32xf32>
    %154 = vector.extract_strided_slice %149 {offsets = [0, 64], sizes = [8, 32], strides = [1, 1]} : vector<8x96xf32> to vector<8x32xf32>
    %155 = arith.mulf %153, %116 : vector<8x32xf32>
    %156 = arith.mulf %152, %151 : vector<8x32xf32>
    %157 = arith.addf %155, %156 : vector<8x32xf32>
    %158 = math.tanh %157 : vector<8x32xf32>
    %159 = arith.mulf %154, %158 : vector<8x32xf32>
    %160 = tpu.concatenate %159, %137 in 1 : vector<8x32xf32>, vector<8x32xf32> -> vector<8x64xf32>
    %cst_45 = arith.constant dense<0.000000e+00> : vector<8x128xf32>
    %161 = tpu.matmul %160, %1, %cst_45 {dimension_numbers = #tpu.dot_dimension_numbers<[1], [0], [0], [1], [0, 0, 1, 1], [], []>} : vector<8x64xf32>, vector<64x128xf32>, vector<8x128xf32> -> vector<8x128xf32>
    %162 = arith.addf %161, %9 : vector<8x128xf32>
    %163 = vector.extract_strided_slice %162 {offsets = [0, 0], sizes = [8, 96], strides = [1, 1]} : vector<8x128xf32> to vector<8x96xf32>
    %164 = arith.negf %163 : vector<8x96xf32>
    %165 = math.exp %164 : vector<8x96xf32>
    %cst_46 = arith.constant 1.000000e+00 : f32
    %166 = vector.broadcast %cst_46 : f32 to vector<8x96xf32>
    %167 = arith.addf %166, %165 : vector<8x96xf32>
    %168 = arith.divf %166, %167 : vector<8x96xf32>
    %169 = vector.extract_strided_slice %162 {offsets = [0, 96], sizes = [8, 32], strides = [1, 1]} : vector<8x128xf32> to vector<8x32xf32>
    %170 = math.tanh %169 : vector<8x32xf32>
    %171 = vector.extract_strided_slice %168 {offsets = [0, 0], sizes = [8, 32], strides = [1, 1]} : vector<8x96xf32> to vector<8x32xf32>
    %172 = vector.extract_strided_slice %168 {offsets = [0, 32], sizes = [8, 32], strides = [1, 1]} : vector<8x96xf32> to vector<8x32xf32>
    %173 = vector.extract_strided_slice %168 {offsets = [0, 64], sizes = [8, 32], strides = [1, 1]} : vector<8x96xf32> to vector<8x32xf32>
    %174 = arith.mulf %172, %135 : vector<8x32xf32>
    %175 = arith.mulf %171, %170 : vector<8x32xf32>
    %176 = arith.addf %174, %175 : vector<8x32xf32>
    %177 = math.tanh %176 : vector<8x32xf32>
    %178 = arith.mulf %173, %177 : vector<8x32xf32>
    %c24 = arith.constant 24 : index
    %c0_47 = arith.constant 0 : index
    %179 = vector.load %arg11[%c24, %c0_47] : memref<56x32xf32, #tpu.memory_space<vmem>>, vector<8x32xf32>
    tpu.vector_store %arg11[%c24, %c0_47], %178 {strides = array<i32>} : memref<56x32xf32, #tpu.memory_space<vmem>>, vector<8x32xf32>,
    %c4 = arith.constant 4 : index
    %c0_48 = arith.constant 0 : index
    %c0_49 = arith.constant 0 : index
    %180 = vector.load %arg1[%c4, %c0_48, %c0_49] : memref<7x8x16xf32, #tpu.memory_space<vmem>>, vector<1x8x16xf32>
    %181 = vector.shape_cast %180 : vector<1x8x16xf32> to vector<8x16xf32>
    %182 = tpu.concatenate %181, %159 in 1 : vector<8x16xf32>, vector<8x32xf32> -> vector<8x48xf32>
    %cst_50 = arith.constant dense<0.000000e+00> : vector<8x128xf32>
    %183 = tpu.matmul %182, %0, %cst_50 {dimension_numbers = #tpu.dot_dimension_numbers<[1], [0], [0], [1], [0, 0, 1, 1], [], []>} : vector<8x48xf32>, vector<48x128xf32>, vector<8x128xf32> -> vector<8x128xf32>
    %184 = arith.addf %183, %6 : vector<8x128xf32>
    %185 = vector.extract_strided_slice %184 {offsets = [0, 0], sizes = [8, 96], strides = [1, 1]} : vector<8x128xf32> to vector<8x96xf32>
    %186 = arith.negf %185 : vector<8x96xf32>
    %187 = math.exp %186 : vector<8x96xf32>
    %cst_51 = arith.constant 1.000000e+00 : f32
    %188 = vector.broadcast %cst_51 : f32 to vector<8x96xf32>
    %189 = arith.addf %188, %187 : vector<8x96xf32>
    %190 = arith.divf %188, %189 : vector<8x96xf32>
    %191 = vector.extract_strided_slice %184 {offsets = [0, 96], sizes = [8, 32], strides = [1, 1]} : vector<8x128xf32> to vector<8x32xf32>
    %192 = math.tanh %191 : vector<8x32xf32>
    %193 = vector.extract_strided_slice %190 {offsets = [0, 0], sizes = [8, 32], strides = [1, 1]} : vector<8x96xf32> to vector<8x32xf32>
    %194 = vector.extract_strided_slice %190 {offsets = [0, 32], sizes = [8, 32], strides = [1, 1]} : vector<8x96xf32> to vector<8x32xf32>
    %195 = vector.extract_strided_slice %190 {offsets = [0, 64], sizes = [8, 32], strides = [1, 1]} : vector<8x96xf32> to vector<8x32xf32>
    %196 = arith.mulf %194, %157 : vector<8x32xf32>
    %197 = arith.mulf %193, %192 : vector<8x32xf32>
    %198 = arith.addf %196, %197 : vector<8x32xf32>
    %199 = math.tanh %198 : vector<8x32xf32>
    %200 = arith.mulf %195, %199 : vector<8x32xf32>
    %201 = tpu.concatenate %200, %178 in 1 : vector<8x32xf32>, vector<8x32xf32> -> vector<8x64xf32>
    %cst_52 = arith.constant dense<0.000000e+00> : vector<8x128xf32>
    %202 = tpu.matmul %201, %1, %cst_52 {dimension_numbers = #tpu.dot_dimension_numbers<[1], [0], [0], [1], [0, 0, 1, 1], [], []>} : vector<8x64xf32>, vector<64x128xf32>, vector<8x128xf32> -> vector<8x128xf32>
    %203 = arith.addf %202, %9 : vector<8x128xf32>
    %204 = vector.extract_strided_slice %203 {offsets = [0, 0], sizes = [8, 96], strides = [1, 1]} : vector<8x128xf32> to vector<8x96xf32>
    %205 = arith.negf %204 : vector<8x96xf32>
    %206 = math.exp %205 : vector<8x96xf32>
    %cst_53 = arith.constant 1.000000e+00 : f32
    %207 = vector.broadcast %cst_53 : f32 to vector<8x96xf32>
    %208 = arith.addf %207, %206 : vector<8x96xf32>
    %209 = arith.divf %207, %208 : vector<8x96xf32>
    %210 = vector.extract_strided_slice %203 {offsets = [0, 96], sizes = [8, 32], strides = [1, 1]} : vector<8x128xf32> to vector<8x32xf32>
    %211 = math.tanh %210 : vector<8x32xf32>
    %212 = vector.extract_strided_slice %209 {offsets = [0, 0], sizes = [8, 32], strides = [1, 1]} : vector<8x96xf32> to vector<8x32xf32>
    %213 = vector.extract_strided_slice %209 {offsets = [0, 32], sizes = [8, 32], strides = [1, 1]} : vector<8x96xf32> to vector<8x32xf32>
    %214 = vector.extract_strided_slice %209 {offsets = [0, 64], sizes = [8, 32], strides = [1, 1]} : vector<8x96xf32> to vector<8x32xf32>
    %215 = arith.mulf %213, %176 : vector<8x32xf32>
    %216 = arith.mulf %212, %211 : vector<8x32xf32>
    %217 = arith.addf %215, %216 : vector<8x32xf32>
    %218 = math.tanh %217 : vector<8x32xf32>
    %219 = arith.mulf %214, %218 : vector<8x32xf32>
    %c32 = arith.constant 32 : index
    %c0_54 = arith.constant 0 : index
    %220 = vector.load %arg11[%c32, %c0_54] : memref<56x32xf32, #tpu.memory_space<vmem>>, vector<8x32xf32>
    tpu.vector_store %arg11[%c32, %c0_54], %219 {strides = array<i32>} : memref<56x32xf32, #tpu.memory_space<vmem>>, vector<8x32xf32>,
    %c5 = arith.constant 5 : index
    %c0_55 = arith.constant 0 : index
    %c0_56 = arith.constant 0 : index
    %221 = vector.load %arg1[%c5, %c0_55, %c0_56] : memref<7x8x16xf32, #tpu.memory_space<vmem>>, vector<1x8x16xf32>
    %222 = vector.shape_cast %221 : vector<1x8x16xf32> to vector<8x16xf32>
    %223 = tpu.concatenate %222, %200 in 1 : vector<8x16xf32>, vector<8x32xf32> -> vector<8x48xf32>
    %cst_57 = arith.constant dense<0.000000e+00> : vector<8x128xf32>
    %224 = tpu.matmul %223, %0, %cst_57 {dimension_numbers = #tpu.dot_dimension_numbers<[1], [0], [0], [1], [0, 0, 1, 1], [], []>} : vector<8x48xf32>, vector<48x128xf32>, vector<8x128xf32> -> vector<8x128xf32>
    %225 = arith.addf %224, %6 : vector<8x128xf32>
    %226 = vector.extract_strided_slice %225 {offsets = [0, 0], sizes = [8, 96], strides = [1, 1]} : vector<8x128xf32> to vector<8x96xf32>
    %227 = arith.negf %226 : vector<8x96xf32>
    %228 = math.exp %227 : vector<8x96xf32>
    %cst_58 = arith.constant 1.000000e+00 : f32
    %229 = vector.broadcast %cst_58 : f32 to vector<8x96xf32>
    %230 = arith.addf %229, %228 : vector<8x96xf32>
    %231 = arith.divf %229, %230 : vector<8x96xf32>
    %232 = vector.extract_strided_slice %225 {offsets = [0, 96], sizes = [8, 32], strides = [1, 1]} : vector<8x128xf32> to vector<8x32xf32>
    %233 = math.tanh %232 : vector<8x32xf32>
    %234 = vector.extract_strided_slice %231 {offsets = [0, 0], sizes = [8, 32], strides = [1, 1]} : vector<8x96xf32> to vector<8x32xf32>
    %235 = vector.extract_strided_slice %231 {offsets = [0, 32], sizes = [8, 32], strides = [1, 1]} : vector<8x96xf32> to vector<8x32xf32>
    %236 = vector.extract_strided_slice %231 {offsets = [0, 64], sizes = [8, 32], strides = [1, 1]} : vector<8x96xf32> to vector<8x32xf32>
    %237 = arith.mulf %235, %198 : vector<8x32xf32>
    %238 = arith.mulf %234, %233 : vector<8x32xf32>
    %239 = arith.addf %237, %238 : vector<8x32xf32>
    %240 = math.tanh %239 : vector<8x32xf32>
    %241 = arith.mulf %236, %240 : vector<8x32xf32>
    %242 = tpu.concatenate %241, %219 in 1 : vector<8x32xf32>, vector<8x32xf32> -> vector<8x64xf32>
    %cst_59 = arith.constant dense<0.000000e+00> : vector<8x128xf32>
    %243 = tpu.matmul %242, %1, %cst_59 {dimension_numbers = #tpu.dot_dimension_numbers<[1], [0], [0], [1], [0, 0, 1, 1], [], []>} : vector<8x64xf32>, vector<64x128xf32>, vector<8x128xf32> -> vector<8x128xf32>
    %244 = arith.addf %243, %9 : vector<8x128xf32>
    %245 = vector.extract_strided_slice %244 {offsets = [0, 0], sizes = [8, 96], strides = [1, 1]} : vector<8x128xf32> to vector<8x96xf32>
    %246 = arith.negf %245 : vector<8x96xf32>
    %247 = math.exp %246 : vector<8x96xf32>
    %cst_60 = arith.constant 1.000000e+00 : f32
    %248 = vector.broadcast %cst_60 : f32 to vector<8x96xf32>
    %249 = arith.addf %248, %247 : vector<8x96xf32>
    %250 = arith.divf %248, %249 : vector<8x96xf32>
    %251 = vector.extract_strided_slice %244 {offsets = [0, 96], sizes = [8, 32], strides = [1, 1]} : vector<8x128xf32> to vector<8x32xf32>
    %252 = math.tanh %251 : vector<8x32xf32>
    %253 = vector.extract_strided_slice %250 {offsets = [0, 0], sizes = [8, 32], strides = [1, 1]} : vector<8x96xf32> to vector<8x32xf32>
    %254 = vector.extract_strided_slice %250 {offsets = [0, 32], sizes = [8, 32], strides = [1, 1]} : vector<8x96xf32> to vector<8x32xf32>
    %255 = vector.extract_strided_slice %250 {offsets = [0, 64], sizes = [8, 32], strides = [1, 1]} : vector<8x96xf32> to vector<8x32xf32>
    %256 = arith.mulf %254, %217 : vector<8x32xf32>
    %257 = arith.mulf %253, %252 : vector<8x32xf32>
    %258 = arith.addf %256, %257 : vector<8x32xf32>
    %259 = math.tanh %258 : vector<8x32xf32>
    %260 = arith.mulf %255, %259 : vector<8x32xf32>
    %c40 = arith.constant 40 : index
    %c0_61 = arith.constant 0 : index
    %261 = vector.load %arg11[%c40, %c0_61] : memref<56x32xf32, #tpu.memory_space<vmem>>, vector<8x32xf32>
    tpu.vector_store %arg11[%c40, %c0_61], %260 {strides = array<i32>} : memref<56x32xf32, #tpu.memory_space<vmem>>, vector<8x32xf32>,
    %c6 = arith.constant 6 : index
    %c0_62 = arith.constant 0 : index
    %c0_63 = arith.constant 0 : index
    %262 = vector.load %arg1[%c6, %c0_62, %c0_63] : memref<7x8x16xf32, #tpu.memory_space<vmem>>, vector<1x8x16xf32>
    %263 = vector.shape_cast %262 : vector<1x8x16xf32> to vector<8x16xf32>
    %264 = tpu.concatenate %263, %241 in 1 : vector<8x16xf32>, vector<8x32xf32> -> vector<8x48xf32>
    %cst_64 = arith.constant dense<0.000000e+00> : vector<8x128xf32>
    %265 = tpu.matmul %264, %0, %cst_64 {dimension_numbers = #tpu.dot_dimension_numbers<[1], [0], [0], [1], [0, 0, 1, 1], [], []>} : vector<8x48xf32>, vector<48x128xf32>, vector<8x128xf32> -> vector<8x128xf32>
    %266 = arith.addf %265, %6 : vector<8x128xf32>
    %267 = vector.extract_strided_slice %266 {offsets = [0, 0], sizes = [8, 96], strides = [1, 1]} : vector<8x128xf32> to vector<8x96xf32>
    %268 = arith.negf %267 : vector<8x96xf32>
    %269 = math.exp %268 : vector<8x96xf32>
    %cst_65 = arith.constant 1.000000e+00 : f32
    %270 = vector.broadcast %cst_65 : f32 to vector<8x96xf32>
    %271 = arith.addf %270, %269 : vector<8x96xf32>
    %272 = arith.divf %270, %271 : vector<8x96xf32>
    %273 = vector.extract_strided_slice %266 {offsets = [0, 96], sizes = [8, 32], strides = [1, 1]} : vector<8x128xf32> to vector<8x32xf32>
    %274 = math.tanh %273 : vector<8x32xf32>
    %275 = vector.extract_strided_slice %272 {offsets = [0, 0], sizes = [8, 32], strides = [1, 1]} : vector<8x96xf32> to vector<8x32xf32>
    %276 = vector.extract_strided_slice %272 {offsets = [0, 32], sizes = [8, 32], strides = [1, 1]} : vector<8x96xf32> to vector<8x32xf32>
    %277 = vector.extract_strided_slice %272 {offsets = [0, 64], sizes = [8, 32], strides = [1, 1]} : vector<8x96xf32> to vector<8x32xf32>
    %278 = arith.mulf %276, %239 : vector<8x32xf32>
    %279 = arith.mulf %275, %274 : vector<8x32xf32>
    %280 = arith.addf %278, %279 : vector<8x32xf32>
    %281 = math.tanh %280 : vector<8x32xf32>
    %282 = arith.mulf %277, %281 : vector<8x32xf32>
    %283 = tpu.concatenate %282, %260 in 1 : vector<8x32xf32>, vector<8x32xf32> -> vector<8x64xf32>
    %cst_66 = arith.constant dense<0.000000e+00> : vector<8x128xf32>
    %284 = tpu.matmul %283, %1, %cst_66 {dimension_numbers = #tpu.dot_dimension_numbers<[1], [0], [0], [1], [0, 0, 1, 1], [], []>} : vector<8x64xf32>, vector<64x128xf32>, vector<8x128xf32> -> vector<8x128xf32>
    %285 = arith.addf %284, %9 : vector<8x128xf32>
    %286 = vector.extract_strided_slice %285 {offsets = [0, 0], sizes = [8, 96], strides = [1, 1]} : vector<8x128xf32> to vector<8x96xf32>
    %287 = arith.negf %286 : vector<8x96xf32>
    %288 = math.exp %287 : vector<8x96xf32>
    %cst_67 = arith.constant 1.000000e+00 : f32
    %289 = vector.broadcast %cst_67 : f32 to vector<8x96xf32>
    %290 = arith.addf %289, %288 : vector<8x96xf32>
    %291 = arith.divf %289, %290 : vector<8x96xf32>
    %292 = vector.extract_strided_slice %285 {offsets = [0, 96], sizes = [8, 32], strides = [1, 1]} : vector<8x128xf32> to vector<8x32xf32>
    %293 = math.tanh %292 : vector<8x32xf32>
    %294 = vector.extract_strided_slice %291 {offsets = [0, 0], sizes = [8, 32], strides = [1, 1]} : vector<8x96xf32> to vector<8x32xf32>
    %295 = vector.extract_strided_slice %291 {offsets = [0, 32], sizes = [8, 32], strides = [1, 1]} : vector<8x96xf32> to vector<8x32xf32>
    %296 = vector.extract_strided_slice %291 {offsets = [0, 64], sizes = [8, 32], strides = [1, 1]} : vector<8x96xf32> to vector<8x32xf32>
    %297 = arith.mulf %295, %258 : vector<8x32xf32>
    %298 = arith.mulf %294, %293 : vector<8x32xf32>
    %299 = arith.addf %297, %298 : vector<8x32xf32>
    %300 = math.tanh %299 : vector<8x32xf32>
    %301 = arith.mulf %296, %300 : vector<8x32xf32>
    %c48 = arith.constant 48 : index
    %c0_68 = arith.constant 0 : index
    %302 = vector.load %arg11[%c48, %c0_68] : memref<56x32xf32, #tpu.memory_space<vmem>>, vector<8x32xf32>
    tpu.vector_store %arg11[%c48, %c0_68], %301 {strides = array<i32>} : memref<56x32xf32, #tpu.memory_space<vmem>>, vector<8x32xf32>,
    %c0_69 = arith.constant 0 : index
    %c0_70 = arith.constant 0 : index
    %303 = vector.load %arg11[%c0_69, %c0_70] : memref<56x32xf32, #tpu.memory_space<vmem>>, vector<56x32xf32>
    %c0_71 = arith.constant 0 : index
    %c0_72 = arith.constant 0 : index
    %c0_73 = arith.constant 0 : index
    %304 = vector.load %arg3[%c0_71, %c0_72, %c0_73] : memref<1x56x1xf32, #tpu.memory_space<vmem>>, vector<1x56x1xf32>
    %305 = vector.shape_cast %304 : vector<1x56x1xf32> to vector<56x1xf32>
    %306 = vector.broadcast %305 : vector<56x1xf32> to vector<56x32xf32>
    %307 = arith.mulf %303, %306 : vector<56x32xf32>
    %cst_74 = arith.constant dense<0.000000e+00> : vector<56x128xf32>
    %308 = tpu.matmul %307, %2, %cst_74 {dimension_numbers = #tpu.dot_dimension_numbers<[1], [0], [0], [1], [0, 0, 1, 1], [], []>} : vector<56x32xf32>, vector<32x128xf32>, vector<56x128xf32> -> vector<56x128xf32>
    %309 = vector.broadcast %3 : vector<1x128xf32> to vector<56x128xf32>
    %310 = arith.addf %308, %309 : vector<56x128xf32>
    %c0_75 = arith.constant 0 : index
    %c0_76 = arith.constant 0 : index
    %c0_77 = arith.constant 0 : index
    %311 = vector.load %arg10[%c0_75, %c0_76, %c0_77] : memref<1x56x128xf32, #tpu.memory_space<vmem>>, vector<1x56x128xf32>
    %312 = vector.shape_cast %311 : vector<1x56x128xf32> to vector<56x128xf32>
    %313 = vector.shape_cast %310 : vector<56x128xf32> to vector<1x56x128xf32>
    tpu.vector_store %arg10[%c0_75, %c0_76, %c0_77], %313 {strides = array<i32>} : memref<1x56x128xf32, #tpu.memory_space<vmem>>, vector<1x56x128xf32>,
    return
  }
  func.func @transform_0(%arg0: i32) -> (i32, i32, i32) {
    %c0_i32 = arith.constant 0 : i32
    %c0_i32_0 = arith.constant 0 : i32
    %c0_i32_1 = arith.constant 0 : i32
    return %c0_i32, %arg0, %c0_i32_0 : i32, i32, i32
  }
  func.func @transform_1(%arg0: i32) -> (i32, i32, i32) {
    %c0_i32 = arith.constant 0 : i32
    %c0_i32_0 = arith.constant 0 : i32
    %c0_i32_1 = arith.constant 0 : i32
    return %c0_i32, %arg0, %c0_i32_0 : i32, i32, i32
  }
  func.func @transform_2(%arg0: i32) -> (i32, i32, i32) {
    %c0_i32 = arith.constant 0 : i32
    %c0_i32_0 = arith.constant 0 : i32
    %c0_i32_1 = arith.constant 0 : i32
    return %arg0, %c0_i32, %c0_i32_0 : i32, i32, i32
  }
  func.func @transform_3(%arg0: i32) -> (i32, i32) {
    %c0_i32 = arith.constant 0 : i32
    %c0_i32_0 = arith.constant 0 : i32
    %c0_i32_1 = arith.constant 0 : i32
    return %c0_i32, %c0_i32_0 : i32, i32
  }
  func.func @transform_4(%arg0: i32) -> (i32, i32) {
    %c0_i32 = arith.constant 0 : i32
    %c0_i32_0 = arith.constant 0 : i32
    %c0_i32_1 = arith.constant 0 : i32
    return %c0_i32, %c0_i32_0 : i32, i32
  }
  func.func @transform_5(%arg0: i32) -> (i32, i32) {
    %c0_i32 = arith.constant 0 : i32
    %c0_i32_0 = arith.constant 0 : i32
    %c0_i32_1 = arith.constant 0 : i32
    return %c0_i32, %c0_i32_0 : i32, i32
  }
  func.func @transform_6(%arg0: i32) -> (i32, i32) {
    %c0_i32 = arith.constant 0 : i32
    %c0_i32_0 = arith.constant 0 : i32
    %c0_i32_1 = arith.constant 0 : i32
    return %c0_i32, %c0_i32_0 : i32, i32
  }
  func.func @transform_7(%arg0: i32) -> (i32, i32) {
    %c0_i32 = arith.constant 0 : i32
    %c0_i32_0 = arith.constant 0 : i32
    %c0_i32_1 = arith.constant 0 : i32
    return %c0_i32, %c0_i32_0 : i32, i32
  }
  func.func @transform_8(%arg0: i32) -> (i32, i32) {
    %c0_i32 = arith.constant 0 : i32
    %c0_i32_0 = arith.constant 0 : i32
    %c0_i32_1 = arith.constant 0 : i32
    return %c0_i32, %c0_i32_0 : i32, i32
  }
  func.func @transform_9(%arg0: i32) -> (i32, i32, i32) {
    %c0_i32 = arith.constant 0 : i32
    %c0_i32_0 = arith.constant 0 : i32
    %c0_i32_1 = arith.constant 0 : i32
    return %arg0, %c0_i32, %c0_i32_0 : i32, i32, i32
  }
}

</mosaic_0001>

<bundles_post_ra>
// kernel: lstm_decoder_forward.1
= control target key start
LH: loop header
LB: loop body
LE: loop exit
PB: predicated region body
PF: predicated region fallthrough
CT: control target
= control target key end

     0   :  { %v2316_v1 = vmov 0.0   ;;  %vm2317_vm0 = vmmov 0   ;;  %s2318_s15 = smov 16   ;;  %vm73_vm1 = vcmask 130048   ;;  %vm75_vm2 = vcmask 392192   ;;  %s2319_s27 = smov 32   ;;  %s2975_s1 = inlined_call_operand.vmem [shape: f32[2,8,32], index: 1, kind: input, shape index: {}]   ;;  %s2976_s3 = inlined_call_operand.vmem [shape: f32[48,128], index: 3, kind: input, shape index: {}]   ;;  %s2977_s0 = inlined_call_operand.vmem [shape: f32[7,8,16], index: 0, kind: input, shape index: {}]   ;;  %s2978_s4 = inlined_call_operand.vmem [shape: f32[1,128], index: 4, kind: input, shape index: {}]   ;;  %s2979_s5 = inlined_call_operand.vmem [shape: f32[64,128], index: 5, kind: input, shape index: {}]   ;;  %s2980_s6 = inlined_call_operand.vmem [shape: f32[1,128], index: 6, kind: input, shape index: {}]   ;;  %s2981_s2 = inlined_call_operand.vmem [shape: f32[1,56,1], index: 2, kind: input, shape index: {}]   ;;  %s2982_s7 = inlined_call_operand.vmem [shape: f32[32,128], index: 7, kind: input, shape index: {}]   ;;  %s2983_s8 = inlined_call_operand.vmem [shape: f32[1,128], index: 8, kind: input, shape index: {}]   ;;  %s2984_s9 = inlined_call_operand.vmem [shape: f32[1,56,128], index: 9, kind: output, shape index: {}]  }
   0x1   :  { %v65_v0 = vld [vmem:[%s2975_s1] sm:$0xff]  ;;  %1926 = vmatprep.subr.mxu1 %v2316_v1  ;;  %v2381_v2 = vld [vmem:[%s2976_s3 + $0x28] sm:$0xff]  ;;  %1938 = vmatprep.mubr.msk.f32.mxu1 %vm2317_vm0, %v2316_v1  ;;  %v2395_v4 = vld [vmem:[%s2976_s3 + $0x18] sm:$0xff]  ;;  %s2321_s24 = smov 80   ;;  %vm181_vm3 = vcmask 261120   ;;  %vm183_vm4 = vcmask 523264  }
   0x2   :  { %v2386_v3 = vld [vmem:[%s2976_s3 + $0x20] sm:$0xff]  ;;  %70 = vrot.lane.b32.xlu0 %v65_v0, %s2318_s15  ;;  %1927 = vmatpush3.msra.mxu1 %v2381_v2  ;;  %v2404_v5 = vld [vmem:[%s2976_s3 + $0x10] sm:$0xff]  ;;  %v2413_v6 = vld [vmem:[%s2976_s3 + $0x8] sm:$0xff] }
   0x3   :  { %1928 = vmatprep.subr.mxu1 %v2316_v1  ;;  %1960 = vmatprep.subr.mxu0 %v2316_v1  ;;  %v2422_v7 = vld [vmem:[%s2976_s3] sm:$0xff]  ;;  %v2458_v25 = vld [vmem:[%s2979_s5 + $0x38] sm:$0xff]  ;;  %v2463_v26 = vld [vmem:[%s2979_s5 + $0x30] sm:$0xff]  ;;  %s2320_s3 = smov 64  }
   0x4   :  { %1929 = vmatpush3.msra.mxu1 %v2386_v3  ;;  %1961 = vmatpush3.msra.mxu0 %v2381_v2  ;;  %v68_v8 = vld [vmem:[%s2977_s0] sm:$0xff]  ;;  %v2470_v27 = vld [vmem:[%s2979_s5 + $0x28] sm:$0xff]  ;;  %v2485_v30 = vld [vmem:[%s2979_s5 + $0x18] sm:$0xff] }
   0x5   :  { %1930 = vmatprep.subr.mxu1 %v2316_v1  ;;  %1962 = vmatprep.subr.mxu0 %v2316_v1  ;;  %v2447_v11 = vld [vmem:[%s2978_s4] ss:$0 sm:$0xff]  ;;  %v1760_v31 = vld [vmem:[%s2975_s1 + $0x8] sm:$0xff]  ;;  %v2495_v32 = vld [vmem:[%s2979_s5 + $0x10] sm:$0xff] }
   0x6   :  { %1931 = vmatpush3.msra.mxu1 %v2395_v4  ;;  %1963 = vmatpush3.msra.mxu0 %v2386_v3  ;;  %v2477_v28 = vld [vmem:[%s2979_s5 + $0x20] sm:$0xff]  ;;  %v2503_v33 = vld [vmem:[%s2979_s5 + $0x8] sm:$0xff] }
   0x7   :  { %1932 = vmatprep.subr.mxu1 %v2316_v1  ;;  %1964 = vmatprep.subr.mxu0 %v2316_v1  ;;  %v2512_v34 = vld [vmem:[%s2979_s5] sm:$0xff]  ;;  %v1765_v40 = vld [vmem:[%s2977_s0 + $0x8] sm:$0xff] }
   0x8   :  { %1933 = vmatpush3.msra.mxu1 %v2404_v5  ;;  %1965 = vmatpush3.msra.mxu0 %v2395_v4  ;;  %v2560_v43 = vld [vmem:[%s2980_s6] ss:$0 sm:$0xff]  ;;  %s2322_s6 = smov 96  }
   0x9   :  { %1934 = vmatprep.subr.mxu1 %v2316_v1  ;;  %1966 = vmatprep.subr.mxu0 %v2316_v1 }
   0xa   :  { %1935 = vmatpush3.msra.mxu1 %v2413_v6  ;;  %1967 = vmatpush3.msra.mxu0 %v2404_v5 }
   0xb   :  { %1936 = vmatprep.subr.mxu1 %v2316_v1  ;;  %1968 = vmatprep.subr.mxu0 %v2316_v1 }
   0xc   :  { %1937 = vmatpush3.msra.mxu1 %v2422_v7  ;;  %1969 = vmatpush3.msra.mxu0 %v2413_v6 }
   0xd   :  { %1941 = vmatprep.subr.mxu1 %v2316_v1  ;;  %1970 = vmatprep.subr.mxu0 %v2316_v1 }
   0xe   :  { %1971 = vmatpush3.msra.mxu0 %v2422_v7  ;;  %1972 = vmatprep.mubr.msk.f32.mxu0 %vm2317_vm0, %v2316_v1 }
   0xf   :  { %1994 = vmatprep.subr.mxu0 %v2316_v1 }
  0x74   :  { %v71_v9 = vpop.permute.xlu0 %70 }
  0x75   :  { %v74_v10 = vsel %vm73_vm1, %v68_v8, %v71_v9 }
  0x76   :  { %1939 = vmatmul.mubr.msk.f32.vlgmr.msra.gmra.mxu1 %vm75_vm2, %v74_v10 }
  0x77   :  { %1957 = vmatprep.mubr.msk.f32.mxu1 %vm2317_vm0, %v2316_v1  ;;  %1942 = vmatpush3.msra.mxu1 %v2458_v25 }
  0x78   :  { %1943 = vmatprep.subr.mxu1 %v2316_v1 }
  0x79   :  { %1944 = vmatpush3.msra.mxu1 %v2463_v26 }
  0x7a   :  { %1945 = vmatprep.subr.mxu1 %v2316_v1 }
  0x7b   :  { %1946 = vmatpush3.msra.mxu1 %v2470_v27 }
  0x7c   :  { %1947 = vmatprep.subr.mxu1 %v2316_v1 }
  0x7d   :  { %1948 = vmatpush3.msra.mxu1 %v2477_v28 }
  0x7e   :  { %1949 = vmatprep.subr.mxu1 %v2316_v1 }
  0x7f   :  { %1950 = vmatpush3.msra.mxu1 %v2485_v30 }
  0x80   :  { %1951 = vmatprep.subr.mxu1 %v2316_v1 }
  0x81   :  { %1952 = vmatpush3.msra.mxu1 %v2495_v32 }
  0x82   :  { %1953 = vmatprep.subr.mxu1 %v2316_v1 }
  0x83   :  { %1954 = vmatpush3.msra.mxu1 %v2503_v33 }
  0x84   :  { %1955 = vmatprep.subr.mxu1 %v2316_v1 }
  0x85   :  { %1956 = vmatpush3.msra.mxu1 %v2512_v34 }
  0x86   :  { %1975 = vmatprep.subr.mxu1 %v2316_v1 }
 0x136   :  { %v145_v12 = vpop.f32.mrf.mxu1 }
 0x137   :  { %v146_v13 = vadd.f32 %v2447_v11, %v145_v12 }
 0x138   :  { %v1940_v14 = vpop.f32.mrf.mxu1 }
 0x139   :  { %2203 = vtanh.f32 %v146_v13  ;;  %v1762_v16 = vmul.f32 -1.442695, %v146_v13 }
 0x13b   :  { %2205 = vpow2.f32 %v1762_v16 }
 0x146   :  { %v2204_v15 = vpop.eup %2203 }
 0x147   :  { %158 = vrot.lane.b32.xlu0 %v2204_v15, %s2319_s27 }
 0x148   :  { %v2206_v17 = vpop.eup %2205 }
 0x149   :  { %v152_v18 = vadd.f32 1.0, %v2206_v17 }
 0x14b   :  { %2207 = vrcp.f32 %v152_v18 }
 0x158   :  { %v2208_v19 = vpop.eup %2207 }
 0x159   :  { %v156_v22 = vmul.f32 0.0, %v2208_v19 }
 0x1b9   :  { %v159_v20 = vpop.permute.xlu0 %158 }
 0x1ba   :  { %v161_v21 = vmul.f32 %v2208_v19, %v159_v20 }
 0x1bc   :  { %163 = vrot.lane.b32.xlu1 %v161_v21, %s2319_s27 }
 0x22e   :  { %v164_v23 = vpop.permute.xlu1 %163 }
 0x22f   :  { %v2452_v24 = vadd.f32 %v164_v23, %v156_v22  ;;  %v1770_v23 = vld [vmem:[%s2977_s0 + $0x10] sm:$0xff] }
 0x231   :  { %2209 = vtanh.f32 %v2452_v24 }
 0x23e   :  { %v2210_v29 = vpop.eup %2209 }
 0x23f   :  { %169 = vrot.lane.b32.xlu1 %v2210_v29, %s2319_s27 }
 0x243   :  { %178 = vrot.lane.b32.xlu1 %v1760_v31, %s2319_s27 }
 0x2b1   :  { %v170_v35 = vpop.permute.xlu1 %169 }
 0x2b2   :  { %v172_v36 = vmul.f32 %v2208_v19, %v170_v35 }
 0x2b4   :  { %174 = vrot.lane.b32.xlu0 %v172_v36, %s2320_s3 }
 0x2b5   :  { %v179_v37 = vpop.permute.xlu1 %178 }
 0x2b8   :  { %288 = vrot.lane.b32.xlu0 %v172_v36, %s2321_s24 }
 0x326   :  { %v175_v38 = vpop.permute.xlu0 %174 }
 0x327   :  { %v182_v39 = vsel %vm181_vm3, %v175_v38, %v179_v37 }
 0x328   :  { %1958 = vmatmul.mubr.msk.f32.vlgmr.msra.gmra.mxu1 %vm183_vm4, %v182_v39 }
 0x329   :  { %1976 = vmatpush3.msra.mxu1 %v2458_v25  ;;  %1991 = vmatprep.mubr.msk.f32.mxu1 %vm2317_vm0, %v2316_v1 }
 0x32a   :  { %v289_v41 = vpop.permute.xlu0 %288  ;;  %1977 = vmatprep.subr.mxu1 %v2316_v1 }
 0x32b   :  { %v291_v42 = vsel %vm73_vm1, %v1765_v40, %v289_v41  ;;  %1978 = vmatpush3.msra.mxu1 %v2463_v26 }
 0x32c   :  { %1973 = vmatmul.mubr.msk.f32.vlgmr.msra.gmra.mxu0 %vm75_vm2, %v291_v42  ;;  %1979 = vmatprep.subr.mxu1 %v2316_v1 }
 0x32d   :  { %1980 = vmatpush3.msra.mxu1 %v2470_v27  ;;  %1995 = vmatpush3.msra.mxu0 %v2381_v2 }
 0x32e   :  { %1981 = vmatprep.subr.mxu1 %v2316_v1  ;;  %1996 = vmatprep.subr.mxu0 %v2316_v1 }
 0x32f   :  { %1982 = vmatpush3.msra.mxu1 %v2477_v28  ;;  %1997 = vmatpush3.msra.mxu0 %v2386_v3 }
 0x330   :  { %1983 = vmatprep.subr.mxu1 %v2316_v1  ;;  %1998 = vmatprep.subr.mxu0 %v2316_v1 }
 0x331   :  { %1984 = vmatpush3.msra.mxu1 %v2485_v30  ;;  %1999 = vmatpush3.msra.mxu0 %v2395_v4 }
 0x332   :  { %1985 = vmatprep.subr.mxu1 %v2316_v1  ;;  %2000 = vmatprep.subr.mxu0 %v2316_v1 }
 0x333   :  { %1986 = vmatpush3.msra.mxu1 %v2495_v32  ;;  %2001 = vmatpush3.msra.mxu0 %v2404_v5 }
 0x334   :  { %1987 = vmatprep.subr.mxu1 %v2316_v1  ;;  %2002 = vmatprep.subr.mxu0 %v2316_v1 }
 0x335   :  { %1988 = vmatpush3.msra.mxu1 %v2503_v33  ;;  %2003 = vmatpush3.msra.mxu0 %v2413_v6 }
 0x336   :  { %1989 = vmatprep.subr.mxu1 %v2316_v1  ;;  %2004 = vmatprep.subr.mxu0 %v2316_v1 }
 0x337   :  { %1990 = vmatpush3.msra.mxu1 %v2512_v34  ;;  %2005 = vmatpush3.msra.mxu0 %v2422_v7 }
 0x338   :  { %2006 = vmatprep.mubr.msk.f32.mxu0 %vm2317_vm0, %v2316_v1  ;;  %2009 = vmatprep.subr.mxu1 %v2316_v1 }
 0x339   :  { %2028 = vmatprep.subr.mxu0 %v2316_v1 }
 0x3e8   :  { %v253_v44 = vpop.f32.mrf.mxu1 }
 0x3e9   :  { %v254_v45 = vadd.f32 %v2560_v43, %v253_v44 }
 0x3ea   :  { %v1959_v46 = vpop.f32.mrf.mxu1 }
 0x3eb   :  { %2211 = vtanh.f32 %v254_v45  ;;  %v1764_v52 = vmul.f32 -1.442695, %v254_v45 }
 0x3ec   :  { %v361_v47 = vpop.f32.mrf.mxu0 }
 0x3ed   :  { %v362_v48 = vadd.f32 %v2447_v11, %v361_v47 }
 0x3ee   :  { %v1974_v49 = vpop.f32.mrf.mxu0 }
 0x3ef   :  { %2213 = vtanh.f32 %v362_v48  ;;  %v1767_v53 = vmul.f32 -1.442695, %v362_v48 }
 0x3f0   :  { %2215 = vpow2.f32 %v1764_v52 }
 0x3f1   :  { %2217 = vpow2.f32 %v1767_v53 }
 0x3f8   :  { %v2212_v50 = vpop.eup %2211 }
 0x3f9   :  { %266 = vrot.lane.b32.xlu1 %v2212_v50, %s2319_s27 }
 0x3fc   :  { %v2214_v51 = vpop.eup %2213 }
 0x3fd   :  { %374 = vrot.lane.b32.xlu0 %v2214_v51, %s2319_s27  ;;  %v2216_v54 = vpop.eup %2215 }
 0x3fe   :  { %v260_v55 = vadd.f32 1.0, %v2216_v54  ;;  %v2218_v56 = vpop.eup %2217 }
 0x3ff   :  { %v368_v57 = vadd.f32 1.0, %v2218_v56 }
 0x400   :  { %2219 = vrcp.f32 %v260_v55 }
 0x401   :  { %2221 = vrcp.f32 %v368_v57 }
 0x40d   :  { %v2220_v58 = vpop.eup %2219 }
 0x40e   :  { %v2222_v61 = vpop.eup %2221  ;;  %v264_v0 = vmul.f32 0.0, %v2220_v58 }
 0x40f   :  { %v372_v10 = vmul.f32 %v2222_v61, %v2452_v24 }
 0x46b   :  { %v267_v59 = vpop.permute.xlu1 %266 }
 0x46c   :  { %v269_v60 = vmul.f32 %v2220_v58, %v267_v59 }
 0x46e   :  { %271 = vrot.lane.b32.xlu1 %v269_v60, %s2319_s27 }
 0x46f   :  { %v375_v62 = vpop.permute.xlu0 %374 }
 0x470   :  { %v377_v63 = vmul.f32 %v2222_v61, %v375_v62 }
 0x472   :  { %379 = vrot.lane.b32.xlu0 %v377_v63, %s2319_s27 }
 0x4e0   :  { %v272_v8 = vpop.permute.xlu1 %271 }
 0x4e1   :  { %v2568_v9 = vadd.f32 %v272_v8, %v264_v0 }
 0x4e3   :  { %2223 = vtanh.f32 %v2568_v9 }
 0x4e4   :  { %v380_v12 = vpop.permute.xlu0 %379 }
 0x4e5   :  { %v2572_v13 = vadd.f32 %v380_v12, %v372_v10 }
 0x4e7   :  { %2225 = vtanh.f32 %v2572_v13 }
 0x4f0   :  { %v2224_v14 = vpop.eup %2223 }
 0x4f1   :  { %277 = vrot.lane.b32.xlu1 %v2224_v14, %s2319_s27  ;;  %v1775_v14 = vld [vmem:[%s2977_s0 + $0x18] sm:$0xff] }
 0x4f4   :  { %v2226_v15 = vpop.eup %2225 }
 0x4f5   :  { %385 = vrot.lane.b32.xlu0 %v2226_v15, %s2319_s27 }
 0x563   :  { %v278_v16 = vpop.permute.xlu1 %277 }
 0x564   :  { %v2577_v17 = vmul.f32 %v2220_v58, %v278_v16 }
 0x566   :  { %393 = vrot.lane.b32.xlu0 %v2577_v17, %s2322_s6 }
 0x567   :  { %v386_v18 = vpop.permute.xlu0 %385 }
 0x568   :  { %v388_v19 = vmul.f32 %v2222_v61, %v386_v18 }
 0x56a   :  { %390 = vrot.lane.b32.xlu1 %v388_v19, %s2320_s3 }
 0x56e   :  { %501 = vrot.lane.b32.xlu1 %v388_v19, %s2321_s24 }
 0x5d8   :  { %v394_v20 = vpop.permute.xlu0 %393 }
 0x5dc   :  { %v391_v21 = vpop.permute.xlu1 %390 }
 0x5dd   :  { %v396_v22 = vsel %vm181_vm3, %v391_v21, %v394_v20 }
 0x5de   :  { %1992 = vmatmul.mubr.msk.f32.vlgmr.msra.gmra.mxu1 %vm183_vm4, %v396_v22 }
 0x5df   :  { %2010 = vmatpush3.msra.mxu1 %v2458_v25  ;;  %2025 = vmatprep.mubr.msk.f32.mxu1 %vm2317_vm0, %v2316_v1 }
 0x5e0   :  { %v502_v24 = vpop.permute.xlu1 %501  ;;  %2011 = vmatprep.subr.mxu1 %v2316_v1 }
 0x5e1   :  { %v504_v29 = vsel %vm73_vm1, %v1770_v23, %v502_v24  ;;  %2012 = vmatpush3.msra.mxu1 %v2463_v26 }
 0x5e2   :  { %2007 = vmatmul.mubr.msk.f32.vlgmr.msra.gmra.mxu0 %vm75_vm2, %v504_v29  ;;  %2013 = vmatprep.subr.mxu1 %v2316_v1 }
 0x5e3   :  { %2014 = vmatpush3.msra.mxu1 %v2470_v27  ;;  %2029 = vmatpush3.msra.mxu0 %v2381_v2 }
 0x5e4   :  { %2015 = vmatprep.subr.mxu1 %v2316_v1  ;;  %2030 = vmatprep.subr.mxu0 %v2316_v1 }
 0x5e5   :  { %2016 = vmatpush3.msra.mxu1 %v2477_v28  ;;  %2031 = vmatpush3.msra.mxu0 %v2386_v3 }
 0x5e6   :  { %2017 = vmatprep.subr.mxu1 %v2316_v1  ;;  %2032 = vmatprep.subr.mxu0 %v2316_v1 }
 0x5e7   :  { %2018 = vmatpush3.msra.mxu1 %v2485_v30  ;;  %2033 = vmatpush3.msra.mxu0 %v2395_v4 }
 0x5e8   :  { %2019 = vmatprep.subr.mxu1 %v2316_v1  ;;  %2034 = vmatprep.subr.mxu0 %v2316_v1 }
 0x5e9   :  { %2020 = vmatpush3.msra.mxu1 %v2495_v32  ;;  %2035 = vmatpush3.msra.mxu0 %v2404_v5 }
 0x5ea   :  { %2021 = vmatprep.subr.mxu1 %v2316_v1  ;;  %2036 = vmatprep.subr.mxu0 %v2316_v1 }
 0x5eb   :  { %2022 = vmatpush3.msra.mxu1 %v2503_v33  ;;  %2037 = vmatpush3.msra.mxu0 %v2413_v6 }
 0x5ec   :  { %2023 = vmatprep.subr.mxu1 %v2316_v1  ;;  %2038 = vmatprep.subr.mxu0 %v2316_v1 }
 0x5ed   :  { %2024 = vmatpush3.msra.mxu1 %v2512_v34  ;;  %2039 = vmatpush3.msra.mxu0 %v2422_v7 }
 0x5ee   :  { %2040 = vmatprep.mubr.msk.f32.mxu0 %vm2317_vm0, %v2316_v1  ;;  %2043 = vmatprep.subr.mxu0 %v2316_v1 }
 0x5ef   :  { %2062 = vmatprep.subr.mxu1 %v2316_v1 }
 0x69e   :  { %v466_v31 = vpop.f32.mrf.mxu1 }
 0x69f   :  { %v467_v35 = vadd.f32 %v2560_v43, %v466_v31 }
 0x6a0   :  { %v1993_v36 = vpop.f32.mrf.mxu1 }
 0x6a1   :  { %2227 = vtanh.f32 %v467_v35  ;;  %v1769_v42 = vmul.f32 -1.442695, %v467_v35 }
 0x6a2   :  { %v574_v37 = vpop.f32.mrf.mxu0 }
 0x6a3   :  { %v575_v38 = vadd.f32 %v2447_v11, %v574_v37 }
 0x6a4   :  { %v2008_v39 = vpop.f32.mrf.mxu0 }
 0x6a5   :  { %2229 = vtanh.f32 %v575_v38  ;;  %v1772_v44 = vmul.f32 -1.442695, %v575_v38 }
 0x6a6   :  { %2231 = vpow2.f32 %v1769_v42 }
 0x6a7   :  { %2233 = vpow2.f32 %v1772_v44 }
 0x6ae   :  { %v2228_v40 = vpop.eup %2227 }
 0x6af   :  { %479 = vrot.lane.b32.xlu0 %v2228_v40, %s2319_s27 }
 0x6b2   :  { %v2230_v41 = vpop.eup %2229 }
 0x6b3   :  { %587 = vrot.lane.b32.xlu1 %v2230_v41, %s2319_s27  ;;  %v2232_v45 = vpop.eup %2231 }
 0x6b4   :  { %v473_v46 = vadd.f32 1.0, %v2232_v45  ;;  %v2234_v47 = vpop.eup %2233 }
 0x6b5   :  { %v581_v48 = vadd.f32 1.0, %v2234_v47 }
 0x6b6   :  { %2235 = vrcp.f32 %v473_v46 }
 0x6b7   :  { %2237 = vrcp.f32 %v581_v48 }
 0x6c3   :  { %v2236_v49 = vpop.eup %2235 }
 0x6c4   :  { %v2238_v52 = vpop.eup %2237  ;;  %v477_v55 = vmul.f32 %v2236_v49, %v2568_v9 }
 0x6c5   :  { %v585_v58 = vmul.f32 %v2238_v52, %v2572_v13 }
 0x721   :  { %v480_v50 = vpop.permute.xlu0 %479 }
 0x722   :  { %v482_v51 = vmul.f32 %v2236_v49, %v480_v50 }
 0x724   :  { %484 = vrot.lane.b32.xlu0 %v482_v51, %s2319_s27 }
 0x725   :  { %v588_v53 = vpop.permute.xlu1 %587 }
 0x726   :  { %v590_v54 = vmul.f32 %v2238_v52, %v588_v53 }
 0x728   :  { %592 = vrot.lane.b32.xlu1 %v590_v54, %s2319_s27 }
 0x796   :  { %v485_v56 = vpop.permute.xlu0 %484 }
 0x797   :  { %v2629_v57 = vadd.f32 %v485_v56, %v477_v55 }
 0x799   :  { %2239 = vtanh.f32 %v2629_v57 }
 0x79a   :  { %v593_v59 = vpop.permute.xlu1 %592 }
 0x79b   :  { %v2633_v60 = vadd.f32 %v593_v59, %v585_v58 }
 0x79d   :  { %2241 = vtanh.f32 %v2633_v60 }
 0x7a6   :  { %v2240_v61 = vpop.eup %2239 }
 0x7a7   :  { %490 = vrot.lane.b32.xlu0 %v2240_v61, %s2319_s27 }
 0x7aa   :  { %v2242_v62 = vpop.eup %2241 }
 0x7ab   :  { %598 = vrot.lane.b32.xlu1 %v2242_v62, %s2319_s27  ;;  %v1780_v62 = vld [vmem:[%s2977_s0 + $0x20] sm:$0xff] }
 0x819   :  { %v491_v63 = vpop.permute.xlu0 %490 }
 0x81a   :  { %v2638_v0 = vmul.f32 %v2236_v49, %v491_v63 }
 0x81c   :  { %606 = vrot.lane.b32.xlu1 %v2638_v0, %s2322_s6 }
 0x81d   :  { %v599_v8 = vpop.permute.xlu1 %598 }
 0x81e   :  { %v601_v9 = vmul.f32 %v2238_v52, %v599_v8 }
 0x820   :  { %603 = vrot.lane.b32.xlu0 %v601_v9, %s2320_s3 }
 0x824   :  { %714 = vrot.lane.b32.xlu0 %v601_v9, %s2321_s24 }
 0x88e   :  { %v607_v10 = vpop.permute.xlu1 %606 }
 0x892   :  { %v604_v12 = vpop.permute.xlu0 %603 }
 0x893   :  { %v609_v13 = vsel %vm181_vm3, %v604_v12, %v607_v10 }
 0x894   :  { %2026 = vmatmul.mubr.msk.f32.vlgmr.msra.gmra.mxu1 %vm183_vm4, %v609_v13 }
 0x895   :  { %2063 = vmatpush3.msra.mxu1 %v2381_v2  ;;  %2074 = vmatprep.mubr.msk.f32.mxu1 %vm2317_vm0, %v2316_v1 }
 0x896   :  { %v715_v15 = vpop.permute.xlu0 %714  ;;  %2064 = vmatprep.subr.mxu1 %v2316_v1 }
 0x897   :  { %v717_v16 = vsel %vm73_vm1, %v1775_v14, %v715_v15  ;;  %2065 = vmatpush3.msra.mxu1 %v2386_v3 }
 0x898   :  { %2041 = vmatmul.mubr.msk.f32.vlgmr.msra.gmra.mxu0 %vm75_vm2, %v717_v16  ;;  %2066 = vmatprep.subr.mxu1 %v2316_v1 }
 0x899   :  { %2044 = vmatpush3.msra.mxu0 %v2458_v25  ;;  %2067 = vmatpush3.msra.mxu1 %v2395_v4 }
 0x89a   :  { %2045 = vmatprep.subr.mxu0 %v2316_v1  ;;  %2068 = vmatprep.subr.mxu1 %v2316_v1 }
 0x89b   :  { %2046 = vmatpush3.msra.mxu0 %v2463_v26  ;;  %2059 = vmatprep.mubr.msk.f32.mxu0 %vm2317_vm0, %v2316_v1 }
 0x89c   :  { %2047 = vmatprep.subr.mxu0 %v2316_v1  ;;  %2069 = vmatpush3.msra.mxu1 %v2404_v5 }
 0x89d   :  { %2048 = vmatpush3.msra.mxu0 %v2470_v27  ;;  %2070 = vmatprep.subr.mxu1 %v2316_v1 }
 0x89e   :  { %2049 = vmatprep.subr.mxu0 %v2316_v1  ;;  %2071 = vmatpush3.msra.mxu1 %v2413_v6 }
 0x89f   :  { %2050 = vmatpush3.msra.mxu0 %v2477_v28  ;;  %2072 = vmatprep.subr.mxu1 %v2316_v1 }
 0x8a0   :  { %2051 = vmatprep.subr.mxu0 %v2316_v1  ;;  %2073 = vmatpush3.msra.mxu1 %v2422_v7 }
 0x8a1   :  { %2052 = vmatpush3.msra.mxu0 %v2485_v30  ;;  %2077 = vmatprep.subr.mxu1 %v2316_v1 }
 0x8a2   :  { %2053 = vmatprep.subr.mxu0 %v2316_v1 }
 0x8a3   :  { %2054 = vmatpush3.msra.mxu0 %v2495_v32 }
 0x8a4   :  { %2055 = vmatprep.subr.mxu0 %v2316_v1 }
 0x8a5   :  { %2056 = vmatpush3.msra.mxu0 %v2503_v33 }
 0x8a6   :  { %2057 = vmatprep.subr.mxu0 %v2316_v1 }
 0x8a7   :  { %2058 = vmatpush3.msra.mxu0 %v2512_v34 }
 0x8a8   :  { %2096 = vmatprep.subr.mxu0 %v2316_v1 }
 0x954   :  { %v679_v18 = vpop.f32.mrf.mxu1 }
 0x955   :  { %v680_v19 = vadd.f32 %v2560_v43, %v679_v18 }
 0x956   :  { %v2027_v20 = vpop.f32.mrf.mxu1 }
 0x957   :  { %2243 = vtanh.f32 %v680_v19  ;;  %v1774_v31 = vmul.f32 -1.442695, %v680_v19 }
 0x958   :  { %v787_v21 = vpop.f32.mrf.mxu0 }
 0x959   :  { %v788_v22 = vadd.f32 %v2447_v11, %v787_v21 }
 0x95a   :  { %v2042_v23 = vpop.f32.mrf.mxu0 }
 0x95b   :  { %2245 = vtanh.f32 %v788_v22  ;;  %v1777_v35 = vmul.f32 -1.442695, %v788_v22 }
 0x95c   :  { %2247 = vpow2.f32 %v1774_v31 }
 0x95d   :  { %2249 = vpow2.f32 %v1777_v35 }
 0x964   :  { %v2244_v24 = vpop.eup %2243 }
 0x965   :  { %692 = vrot.lane.b32.xlu1 %v2244_v24, %s2319_s27 }
 0x968   :  { %v2246_v29 = vpop.eup %2245 }
 0x969   :  { %800 = vrot.lane.b32.xlu0 %v2246_v29, %s2319_s27  ;;  %v2248_v36 = vpop.eup %2247 }
 0x96a   :  { %v686_v37 = vadd.f32 1.0, %v2248_v36  ;;  %v2250_v38 = vpop.eup %2249 }
 0x96b   :  { %v794_v39 = vadd.f32 1.0, %v2250_v38 }
 0x96c   :  { %2251 = vrcp.f32 %v686_v37 }
 0x96d   :  { %2253 = vrcp.f32 %v794_v39 }
 0x979   :  { %v2252_v40 = vpop.eup %2251 }
 0x97a   :  { %v2254_v44 = vpop.eup %2253  ;;  %v690_v47 = vmul.f32 %v2252_v40, %v2629_v57 }
 0x97b   :  { %v798_v50 = vmul.f32 %v2254_v44, %v2633_v60 }
 0x9d7   :  { %v693_v41 = vpop.permute.xlu1 %692 }
 0x9d8   :  { %v695_v42 = vmul.f32 %v2252_v40, %v693_v41 }
 0x9da   :  { %697 = vrot.lane.b32.xlu1 %v695_v42, %s2319_s27 }
 0x9db   :  { %v801_v45 = vpop.permute.xlu0 %800 }
 0x9dc   :  { %v803_v46 = vmul.f32 %v2254_v44, %v801_v45 }
 0x9de   :  { %805 = vrot.lane.b32.xlu0 %v803_v46, %s2319_s27 }
 0xa4c   :  { %v698_v48 = vpop.permute.xlu1 %697 }
 0xa4d   :  { %v2690_v49 = vadd.f32 %v698_v48, %v690_v47 }
 0xa4f   :  { %2255 = vtanh.f32 %v2690_v49 }
 0xa50   :  { %v806_v51 = vpop.permute.xlu0 %805 }
 0xa51   :  { %v2694_v52 = vadd.f32 %v806_v51, %v798_v50 }
 0xa53   :  { %2257 = vtanh.f32 %v2694_v52 }
 0xa5c   :  { %v2256_v53 = vpop.eup %2255 }
 0xa5d   :  { %703 = vrot.lane.b32.xlu1 %v2256_v53, %s2319_s27 }
 0xa60   :  { %v2258_v54 = vpop.eup %2257 }
 0xa61   :  { %811 = vrot.lane.b32.xlu0 %v2258_v54, %s2319_s27 }
 0xacf   :  { %v704_v55 = vpop.permute.xlu1 %703 }
 0xad0   :  { %v2699_v56 = vmul.f32 %v2252_v40, %v704_v55  ;;  %v1785_v55 = vld [vmem:[%s2977_s0 + $0x28] sm:$0xff] }
 0xad2   :  { %819 = vrot.lane.b32.xlu0 %v2699_v56, %s2322_s6 }
 0xad3   :  { %v812_v57 = vpop.permute.xlu0 %811 }
 0xad4   :  { %v814_v58 = vmul.f32 %v2254_v44, %v812_v57 }
 0xad6   :  { %816 = vrot.lane.b32.xlu1 %v814_v58, %s2320_s3 }
 0xada   :  { %927 = vrot.lane.b32.xlu1 %v814_v58, %s2321_s24 }
 0xb44   :  { %v820_v59 = vpop.permute.xlu0 %819 }
 0xb48   :  { %v817_v60 = vpop.permute.xlu1 %816 }
 0xb49   :  { %v822_v61 = vsel %vm181_vm3, %v817_v60, %v820_v59 }
 0xb4a   :  { %2060 = vmatmul.mubr.msk.f32.vlgmr.msra.gmra.mxu0 %vm183_vm4, %v822_v61 }
 0xb4b   :  { %2097 = vmatpush3.msra.mxu0 %v2381_v2  ;;  %2108 = vmatprep.mubr.msk.f32.mxu0 %vm2317_vm0, %v2316_v1 }
 0xb4c   :  { %v928_v63 = vpop.permute.xlu1 %927  ;;  %2098 = vmatprep.subr.mxu0 %v2316_v1 }
 0xb4d   :  { %v930_v8 = vsel %vm73_vm1, %v1780_v62, %v928_v63  ;;  %2099 = vmatpush3.msra.mxu0 %v2386_v3 }
 0xb4e   :  { %2075 = vmatmul.mubr.msk.f32.vlgmr.msra.gmra.mxu1 %vm75_vm2, %v930_v8  ;;  %2100 = vmatprep.subr.mxu0 %v2316_v1 }
 0xb4f   :  { %2078 = vmatpush3.msra.mxu1 %v2458_v25  ;;  %2101 = vmatpush3.msra.mxu0 %v2395_v4 }
 0xb50   :  { %2079 = vmatprep.subr.mxu1 %v2316_v1  ;;  %2102 = vmatprep.subr.mxu0 %v2316_v1 }
 0xb51   :  { %2080 = vmatpush3.msra.mxu1 %v2463_v26  ;;  %2093 = vmatprep.mubr.msk.f32.mxu1 %vm2317_vm0, %v2316_v1 }
 0xb52   :  { %2081 = vmatprep.subr.mxu1 %v2316_v1  ;;  %2103 = vmatpush3.msra.mxu0 %v2404_v5 }
 0xb53   :  { %2082 = vmatpush3.msra.mxu1 %v2470_v27  ;;  %2104 = vmatprep.subr.mxu0 %v2316_v1 }
 0xb54   :  { %2083 = vmatprep.subr.mxu1 %v2316_v1  ;;  %2105 = vmatpush3.msra.mxu0 %v2413_v6 }
 0xb55   :  { %2084 = vmatpush3.msra.mxu1 %v2477_v28  ;;  %2106 = vmatprep.subr.mxu0 %v2316_v1 }
 0xb56   :  { %2085 = vmatprep.subr.mxu1 %v2316_v1  ;;  %2107 = vmatpush3.msra.mxu0 %v2422_v7 }
 0xb57   :  { %2086 = vmatpush3.msra.mxu1 %v2485_v30  ;;  %2111 = vmatprep.subr.mxu0 %v2316_v1 }
 0xb58   :  { %2087 = vmatprep.subr.mxu1 %v2316_v1 }
 0xb59   :  { %2088 = vmatpush3.msra.mxu1 %v2495_v32 }
 0xb5a   :  { %2089 = vmatprep.subr.mxu1 %v2316_v1 }
 0xb5b   :  { %2090 = vmatpush3.msra.mxu1 %v2503_v33 }
 0xb5c   :  { %2091 = vmatprep.subr.mxu1 %v2316_v1 }
 0xb5d   :  { %2092 = vmatpush3.msra.mxu1 %v2512_v34 }
 0xb5e   :  { %2130 = vmatprep.subr.mxu1 %v2316_v1 }
 0xc0a   :  { %v892_v9 = vpop.f32.mrf.mxu0 }
 0xc0b   :  { %v893_v10 = vadd.f32 %v2560_v43, %v892_v9 }
 0xc0c   :  { %v2061_v12 = vpop.f32.mrf.mxu0 }
 0xc0d   :  { %2259 = vtanh.f32 %v893_v10  ;;  %v1779_v19 = vmul.f32 -1.442695, %v893_v10 }
 0xc0e   :  { %v1000_v13 = vpop.f32.mrf.mxu1 }
 0xc0f   :  { %v1001_v14 = vadd.f32 %v2447_v11, %v1000_v13 }
 0xc10   :  { %v2076_v15 = vpop.f32.mrf.mxu1 }
 0xc11   :  { %2261 = vtanh.f32 %v1001_v14  ;;  %v1782_v20 = vmul.f32 -1.442695, %v1001_v14 }
 0xc12   :  { %2263 = vpow2.f32 %v1779_v19 }
 0xc13   :  { %2265 = vpow2.f32 %v1782_v20 }
 0xc1a   :  { %v2260_v16 = vpop.eup %2259 }
 0xc1b   :  { %905 = vrot.lane.b32.xlu0 %v2260_v16, %s2319_s27 }
 0xc1e   :  { %v2262_v18 = vpop.eup %2261 }
 0xc1f   :  { %1013 = vrot.lane.b32.xlu1 %v2262_v18, %s2319_s27  ;;  %v2264_v21 = vpop.eup %2263 }
 0xc20   :  { %v899_v22 = vadd.f32 1.0, %v2264_v21  ;;  %v2266_v23 = vpop.eup %2265 }
 0xc21   :  { %v1007_v24 = vadd.f32 1.0, %v2266_v23 }
 0xc22   :  { %2267 = vrcp.f32 %v899_v22 }
 0xc23   :  { %2269 = vrcp.f32 %v1007_v24 }
 0xc2f   :  { %v2268_v29 = vpop.eup %2267 }
 0xc30   :  { %v2270_v36 = vpop.eup %2269  ;;  %v903_v39 = vmul.f32 %v2268_v29, %v2690_v49 }
 0xc31   :  { %v1011_v42 = vmul.f32 %v2270_v36, %v2694_v52 }
 0xc8d   :  { %v906_v31 = vpop.permute.xlu0 %905 }
 0xc8e   :  { %v908_v35 = vmul.f32 %v2268_v29, %v906_v31 }
 0xc90   :  { %910 = vrot.lane.b32.xlu0 %v908_v35, %s2319_s27 }
 0xc91   :  { %v1014_v37 = vpop.permute.xlu1 %1013 }
 0xc92   :  { %v1016_v38 = vmul.f32 %v2270_v36, %v1014_v37 }
 0xc94   :  { %1018 = vrot.lane.b32.xlu1 %v1016_v38, %s2319_s27 }
 0xd02   :  { %v911_v40 = vpop.permute.xlu0 %910 }
 0xd03   :  { %v2751_v41 = vadd.f32 %v911_v40, %v903_v39 }
 0xd05   :  { %2271 = vtanh.f32 %v2751_v41 }
 0xd06   :  { %v1019_v44 = vpop.permute.xlu1 %1018 }
 0xd07   :  { %v2755_v45 = vadd.f32 %v1019_v44, %v1011_v42 }
 0xd09   :  { %2273 = vtanh.f32 %v2755_v45 }
 0xd12   :  { %v2272_v46 = vpop.eup %2271 }
 0xd13   :  { %916 = vrot.lane.b32.xlu0 %v2272_v46, %s2319_s27 }
 0xd16   :  { %v2274_v47 = vpop.eup %2273 }
 0xd17   :  { %1024 = vrot.lane.b32.xlu1 %v2274_v47, %s2319_s27 }
 0xd85   :  { %v917_v48 = vpop.permute.xlu0 %916 }
 0xd86   :  { %v2760_v49 = vmul.f32 %v2268_v29, %v917_v48 }
 0xd88   :  { %1032 = vrot.lane.b32.xlu1 %v2760_v49, %s2322_s6 }
 0xd89   :  { %v1025_v50 = vpop.permute.xlu1 %1024 }
 0xd8a   :  { %v1027_v51 = vmul.f32 %v2270_v36, %v1025_v50 }
 0xd8c   :  { %1029 = vrot.lane.b32.xlu0 %v1027_v51, %s2320_s3 }
 0xd90   :  { %1140 = vrot.lane.b32.xlu0 %v1027_v51, %s2321_s24 }
 0xdfa   :  { %v1033_v52 = vpop.permute.xlu1 %1032 }
 0xdfe   :  { %v1030_v53 = vpop.permute.xlu0 %1029 }
 0xdff   :  { %v1035_v54 = vsel %vm181_vm3, %v1030_v53, %v1033_v52 }
 0xe00   :  { %2094 = vmatmul.mubr.msk.f32.vlgmr.msra.gmra.mxu1 %vm183_vm4, %v1035_v54 }
 0xe01   :  { %2131 = vmatpush3.msra.mxu1 %v2381_v2  ;;  %2142 = vmatprep.mubr.msk.f32.mxu1 %vm2317_vm0, %v2316_v1 }
 0xe02   :  { %v1141_v57 = vpop.permute.xlu0 %1140  ;;  %2132 = vmatprep.subr.mxu1 %v2316_v1 }
 0xe03   :  { %v1143_v58 = vsel %vm73_vm1, %v1785_v55, %v1141_v57  ;;  %2133 = vmatpush3.msra.mxu1 %v2386_v3 }
 0xe04   :  { %2109 = vmatmul.mubr.msk.f32.vlgmr.msra.gmra.mxu0 %vm75_vm2, %v1143_v58  ;;  %2134 = vmatprep.subr.mxu1 %v2316_v1 }
 0xe05   :  { %2112 = vmatpush3.msra.mxu0 %v2458_v25  ;;  %2135 = vmatpush3.msra.mxu1 %v2395_v4 }
 0xe06   :  { %2113 = vmatprep.subr.mxu0 %v2316_v1  ;;  %2136 = vmatprep.subr.mxu1 %v2316_v1 }
 0xe07   :  { %2114 = vmatpush3.msra.mxu0 %v2463_v26  ;;  %2127 = vmatprep.mubr.msk.f32.mxu0 %vm2317_vm0, %v2316_v1 }
 0xe08   :  { %2115 = vmatprep.subr.mxu0 %v2316_v1  ;;  %2137 = vmatpush3.msra.mxu1 %v2404_v5 }
 0xe09   :  { %2116 = vmatpush3.msra.mxu0 %v2470_v27  ;;  %2138 = vmatprep.subr.mxu1 %v2316_v1 }
 0xe0a   :  { %2117 = vmatprep.subr.mxu0 %v2316_v1  ;;  %2139 = vmatpush3.msra.mxu1 %v2413_v6 }
 0xe0b   :  { %2118 = vmatpush3.msra.mxu0 %v2477_v28  ;;  %2140 = vmatprep.subr.mxu1 %v2316_v1 }
 0xe0c   :  { %2119 = vmatprep.subr.mxu0 %v2316_v1  ;;  %2141 = vmatpush3.msra.mxu1 %v2422_v7 }
 0xe0d   :  { %2120 = vmatpush3.msra.mxu0 %v2485_v30  ;;  %2145 = vmatprep.subr.mxu1 %v2316_v1 }
 0xe0e   :  { %2121 = vmatprep.subr.mxu0 %v2316_v1 }
 0xe0f   :  { %2122 = vmatpush3.msra.mxu0 %v2495_v32 }
 0xe10   :  { %2123 = vmatprep.subr.mxu0 %v2316_v1 }
 0xe11   :  { %2124 = vmatpush3.msra.mxu0 %v2503_v33 }
 0xe12   :  { %2125 = vmatprep.subr.mxu0 %v2316_v1 }
 0xe13   :  { %2126 = vmatpush3.msra.mxu0 %v2512_v34 }
 0xe14   :  { %2164 = vmatprep.subr.mxu0 %v2316_v1 }
 0xec0   :  { %v1105_v2 = vpop.f32.mrf.mxu1 }
 0xec1   :  { %v1106_v3 = vadd.f32 %v2560_v43, %v1105_v2 }
 0xec2   :  { %v2095_v4 = vpop.f32.mrf.mxu1 }
 0xec3   :  { %2275 = vtanh.f32 %v1106_v3  ;;  %v1784_v61 = vmul.f32 -1.442695, %v1106_v3 }
 0xec4   :  { %v1213_v5 = vpop.f32.mrf.mxu0 }
 0xec5   :  { %v1214_v6 = vadd.f32 %v2447_v11, %v1213_v5 }
 0xec6   :  { %v2110_v7 = vpop.f32.mrf.mxu0 }
 0xec7   :  { %2277 = vtanh.f32 %v1214_v6  ;;  %v1787_v62 = vmul.f32 -1.442695, %v1214_v6 }
 0xec8   :  { %2279 = vpow2.f32 %v1784_v61 }
 0xec9   :  { %2281 = vpow2.f32 %v1787_v62 }
 0xed0   :  { %v2276_v59 = vpop.eup %2275 }
 0xed1   :  { %1118 = vrot.lane.b32.xlu1 %v2276_v59, %s2319_s27 }
 0xed4   :  { %v2278_v60 = vpop.eup %2277 }
 0xed5   :  { %1226 = vrot.lane.b32.xlu0 %v2278_v60, %s2319_s27  ;;  %v2280_v63 = vpop.eup %2279 }
 0xed6   :  { %v1112_v8 = vadd.f32 1.0, %v2280_v63  ;;  %v2282_v9 = vpop.eup %2281 }
 0xed7   :  { %v1220_v10 = vadd.f32 1.0, %v2282_v9 }
 0xed8   :  { %2283 = vrcp.f32 %v1112_v8 }
 0xed9   :  { %2285 = vrcp.f32 %v1220_v10 }
 0xee5   :  { %v2284_v12 = vpop.eup %2283 }
 0xee6   :  { %v2286_v14 = vpop.eup %2285  ;;  %v1116_v18 = vmul.f32 %v2284_v12, %v2751_v41  ;;  %v1790_v41 = vld [vmem:[%s2977_s0 + $0x30] sm:$0xff] }
 0xee7   :  { %v1224_v21 = vmul.f32 %v2286_v14, %v2755_v45 }
 0xf43   :  { %v1119_v11 = vpop.permute.xlu1 %1118 }
 0xf44   :  { %v1121_v13 = vmul.f32 %v2284_v12, %v1119_v11 }
 0xf46   :  { %1123 = vrot.lane.b32.xlu1 %v1121_v13, %s2319_s27 }
 0xf47   :  { %v1227_v15 = vpop.permute.xlu0 %1226 }
 0xf48   :  { %v1229_v16 = vmul.f32 %v2286_v14, %v1227_v15 }
 0xf4a   :  { %1231 = vrot.lane.b32.xlu0 %v1229_v16, %s2319_s27  ;;  %v2323_v16 = vmov 0  }
 0xf4b   :  { %2202 = vset.pattern.permute.xlu1 %v2323_v16  ;;  %2201 = vset.pattern.permute.xlu0 %v2323_v16 }
 0xfb8   :  { %v1124_v19 = vpop.permute.xlu1 %1123 }
 0xfb9   :  { %v2812_v20 = vadd.f32 %v1124_v19, %v1116_v18 }
 0xfbb   :  { %2287 = vtanh.f32 %v2812_v20 }
 0xfbc   :  { %v1232_v22 = vpop.permute.xlu0 %1231 }
 0xfbd   :  { %v2816_v23 = vadd.f32 %v1232_v22, %v1224_v21 }
 0xfbf   :  { %2289 = vtanh.f32 %v2816_v23 }
 0xfc8   :  { %v2288_v24 = vpop.eup %2287 }
 0xfc9   :  { %1129 = vrot.lane.b32.xlu1 %v2288_v24, %s2319_s27 }
 0xfcc   :  { %v2290_v29 = vpop.eup %2289 }
 0xfcd   :  { %1237 = vrot.lane.b32.xlu0 %v2290_v29, %s2319_s27  ;;  %v1573_v29 = vld [vmem:[%s2981_s2 + $0x10] sm:$0xff] }
0x103b   :  { %v1130_v31 = vpop.permute.xlu1 %1129 }
0x103c   :  { %v2821_v35 = vmul.f32 %v2284_v12, %v1130_v31  ;;  %v1574_v31 = vld [vmem:[%s2981_s2 + $0x18] sm:$0xff] }
0x103e   :  { %1245 = vrot.lane.b32.xlu0 %v2821_v35, %s2322_s6 }
0x103f   :  { %v1238_v36 = vpop.permute.xlu0 %1237 }
0x1040   :  { %v1240_v37 = vmul.f32 %v2286_v14, %v1238_v36  ;;  %v1577_v36 = vld [vmem:[%s2981_s2 + $0x30] sm:$0xff] }
0x1042   :  { %1242 = vrot.lane.b32.xlu1 %v1240_v37, %s2320_s3 }
0x1046   :  { %1353 = vrot.lane.b32.xlu1 %v1240_v37, %s2321_s24 }
0x10b0   :  { %v1246_v38 = vpop.permute.xlu0 %1245 }
0x10b4   :  { %v1243_v39 = vpop.permute.xlu1 %1242 }
0x10b5   :  { %v1248_v40 = vsel %vm181_vm3, %v1243_v39, %v1246_v38 }
0x10b6   :  { %2128 = vmatmul.mubr.msk.f32.vlgmr.msra.gmra.mxu0 %vm183_vm4, %v1248_v40 }
0x10b7   :  { %2172 = vmatprep.mubr.msk.f32.mxu0 %vm2317_vm0, %v2316_v1 }
0x10b8   :  { %v1354_v42 = vpop.permute.xlu1 %1353 }
0x10b9   :  { %v1356_v44 = vsel %vm73_vm1, %v1790_v41, %v1354_v42  ;;  %v49_v41 = vld [vmem:[%s2982_s7 + $0x18] sm:$0xff]  ;;  %v48_v42 = vld [vmem:[%s2982_s7 + $0x10] sm:$0xff] }
0x10ba   :  { %2143 = vmatmul.mubr.msk.f32.vlgmr.msra.gmra.mxu1 %vm75_vm2, %v1356_v44  ;;  %2165 = vmatpush3.msra.mxu0 %v49_v41 }
0x10bb   :  { %2146 = vmatpush3.msra.mxu1 %v2458_v25  ;;  %2161 = vmatprep.mubr.msk.f32.mxu1 %vm2317_vm0, %v2316_v1 }
0x10bc   :  { %2147 = vmatprep.subr.mxu1 %v2316_v1  ;;  %2166 = vmatprep.subr.mxu0 %v2316_v1 }
0x10bd   :  { %2148 = vmatpush3.msra.mxu1 %v2463_v26  ;;  %2167 = vmatpush3.msra.mxu0 %v48_v42 }
0x10be   :  { %2149 = vmatprep.subr.mxu1 %v2316_v1  ;;  %2168 = vmatprep.subr.mxu0 %v2316_v1 }
0x10bf   :  { %2150 = vmatpush3.msra.mxu1 %v2470_v27 }
0x10c0   :  { %2151 = vmatprep.subr.mxu1 %v2316_v1 }
0x10c1   :  { %2152 = vmatpush3.msra.mxu1 %v2477_v28 }
0x10c2   :  { %2153 = vmatprep.subr.mxu1 %v2316_v1 }
0x10c3   :  { %2154 = vmatpush3.msra.mxu1 %v2485_v30  ;;  %v2315_v30 = vld [vmem:[%s2978_s4] ss:$0 sm:$0xff] }
0x10c4   :  { %2155 = vmatprep.subr.mxu1 %v2316_v1 }
0x10c5   :  { %2156 = vmatpush3.msra.mxu1 %v2495_v32 }
0x10c6   :  { %2157 = vmatprep.subr.mxu1 %v2316_v1 }
0x10c7   :  { %2158 = vmatpush3.msra.mxu1 %v2503_v33 }
0x10c8   :  { %2159 = vmatprep.subr.mxu1 %v2316_v1 }
0x10c9   :  { %2160 = vmatpush3.msra.mxu1 %v2512_v34 }
0x1176   :  { %v1318_v25 = vpop.f32.mrf.mxu0 }
0x1177   :  { %v1319_v26 = vadd.f32 %v2560_v43, %v1318_v25  ;;  %v47_v25 = vld [vmem:[%s2982_s7 + $0x8] sm:$0xff] }
0x1178   :  { %v2129_v27 = vpop.f32.mrf.mxu0  ;;  %2169 = vmatpush3.msra.mxu0 %v47_v25 }
0x1179   :  { %2291 = vtanh.f32 %v1319_v26  ;;  %v1789_v34 = vmul.f32 -1.442695, %v1319_v26  ;;  %2170 = vmatprep.subr.mxu0 %v2316_v1  ;;  %v46_v27 = vld [vmem:[%s2982_s7] sm:$0xff] }
0x117a   :  { %v1426_v28 = vpop.f32.mrf.mxu1  ;;  %2171 = vmatpush3.msra.mxu0 %v46_v27 }
0x117b   :  { %v1427_v45 = vadd.f32 %v2315_v30, %v1426_v28  ;;  %v1571_v28 = vld [vmem:[%s2981_s2] sm:$0xff] }
0x117c   :  { %v2144_v32 = vpop.f32.mrf.mxu1 }
0x117d   :  { %2293 = vtanh.f32 %v1427_v45  ;;  %v1792_v47 = vmul.f32 -1.442695, %v1427_v45 }
0x117e   :  { %2295 = vpow2.f32 %v1789_v34 }
0x117f   :  { %2297 = vpow2.f32 %v1792_v47 }
0x1186   :  { %v2292_v46 = vpop.eup %2291 }
0x1187   :  { %1331 = vrot.lane.b32.xlu0 %v2292_v46, %s2319_s27 }
0x118a   :  { %v2294_v33 = vpop.eup %2293 }
0x118b   :  { %1439 = vrot.lane.b32.xlu1 %v2294_v33, %s2319_s27  ;;  %v2296_v48 = vpop.eup %2295 }
0x118c   :  { %v1325_v50 = vadd.f32 1.0, %v2296_v48  ;;  %v2298_v51 = vpop.eup %2297 }
0x118d   :  { %v1433_v52 = vadd.f32 1.0, %v2298_v51 }
0x118e   :  { %2299 = vrcp.f32 %v1325_v50 }
0x118f   :  { %2301 = vrcp.f32 %v1433_v52 }
0x119b   :  { %v2300_v53 = vpop.eup %2299 }
0x119c   :  { %v2302_v57 = vpop.eup %2301  ;;  %v1329_v3 = vmul.f32 %v2300_v53, %v2812_v20 }
0x119d   :  { %v1437_v6 = vmul.f32 %v2302_v57, %v2816_v23 }
0x11f9   :  { %v1332_v54 = vpop.permute.xlu0 %1331 }
0x11fa   :  { %v1334_v55 = vmul.f32 %v2300_v53, %v1332_v54 }
0x11fc   :  { %1336 = vrot.lane.b32.xlu0 %v1334_v55, %s2319_s27 }
0x11fd   :  { %v1440_v58 = vpop.permute.xlu1 %1439 }
0x11fe   :  { %v1442_v2 = vmul.f32 %v2302_v57, %v1440_v58 }
0x1200   :  { %1444 = vrot.lane.b32.xlu1 %v1442_v2, %s2319_s27 }
0x126e   :  { %v1337_v4 = vpop.permute.xlu0 %1336 }
0x126f   :  { %v1339_v5 = vadd.f32 %v1337_v4, %v1329_v3 }
0x1271   :  { %2303 = vtanh.f32 %v1339_v5 }
0x1272   :  { %v1445_v7 = vpop.permute.xlu1 %1444 }
0x1273   :  { %v1447_v59 = vadd.f32 %v1445_v7, %v1437_v6 }
0x1275   :  { %2305 = vtanh.f32 %v1447_v59 }
0x127e   :  { %v2304_v60 = vpop.eup %2303 }
0x127f   :  { %1342 = vrot.lane.b32.xlu0 %v2304_v60, %s2319_s27 }
0x1282   :  { %v2306_v61 = vpop.eup %2305 }
0x1283   :  { %1450 = vrot.lane.b32.xlu1 %v2306_v61, %s2319_s27 }
0x12f1   :  { %v1343_v62 = vpop.permute.xlu0 %1342 }
0x12f2   :  { %v2865_v63 = vmul.f32 %v2300_v53, %v1343_v62  ;;  %v1795_v62 = vld [vmem:[%s2983_s8] ss:$0 sm:$0xff] }
0x12f4   :  { %1458 = vrot.lane.b32.xlu1 %v2865_v63, %s2322_s6 }
0x12f5   :  { %v1451_v8 = vpop.permute.xlu1 %1450 }
0x12f6   :  { %v1453_v9 = vmul.f32 %v2302_v57, %v1451_v8 }
0x12f8   :  { %1455 = vrot.lane.b32.xlu0 %v1453_v9, %s2320_s3 }
0x1366   :  { %v1459_v10 = vpop.permute.xlu1 %1458 }
0x136a   :  { %v1456_v12 = vpop.permute.xlu0 %1455 }
0x136b   :  { %v1461_v11 = vsel %vm181_vm3, %v1456_v12, %v1459_v10 }
0x136c   :  { %2162 = vmatmul.mubr.msk.f32.vlgmr.msra.gmra.mxu1 %vm183_vm4, %v1461_v11 }
0x142c   :  { %v1531_v13 = vpop.f32.mrf.mxu1 }
0x142d   :  { %v1532_v14 = vadd.f32 %v2560_v43, %v1531_v13  ;;  %v1572_v43 = vld [vmem:[%s2981_s2 + $0x8] sm:$0xff] }
0x142e   :  { %v2163_v15 = vpop.f32.mrf.mxu1 }
0x142f   :  { %2307 = vtanh.f32 %v1532_v14  ;;  %v1794_v19 = vmul.f32 -1.442695, %v1532_v14 }
0x1431   :  { %2309 = vpow2.f32 %v1794_v19 }
0x143c   :  { %v2308_v18 = vpop.eup %2307 }
0x143d   :  { %1544 = vrot.lane.b32.xlu0 %v2308_v18, %s2319_s27 }
0x143e   :  { %v2310_v20 = vpop.eup %2309 }
0x143f   :  { %v1538_v21 = vadd.f32 1.0, %v2310_v20 }
0x1441   :  { %2311 = vrcp.f32 %v1538_v21 }
0x144e   :  { %v2312_v22 = vpop.eup %2311 }
0x144f   :  { %v1542_v37 = vmul.f32 %v2312_v22, %v1339_v5 }
0x14af   :  { %v1545_v23 = vpop.permute.xlu0 %1544 }
0x14b0   :  { %v1547_v24 = vmul.f32 %v2312_v22, %v1545_v23 }
0x14b2   :  { %1549 = vrot.lane.b32.xlu1 %v1547_v24, %s2319_s27 }
0x14b6   :  { %282 = vrot.lane.b32.xlu1 %v2577_v17, %s2320_s3  ;;  %v1575_v17 = vld [vmem:[%s2981_s2 + $0x20] sm:$0xff] }
0x14ba   :  { %495 = vrot.lane.b32.xlu1 %v2638_v0, %s2320_s3  ;;  %v1576_v0 = vld [vmem:[%s2981_s2 + $0x28] sm:$0xff] }
0x14be   :  { %1585 = vperm.xlu1 %2202, %v1572_v43  }
0x14c2   :  { %1590 = vperm.xlu1 %2202, %v1573_v29  }
0x14c6   :  { %1595 = vperm.xlu1 %2202, %v1574_v31  }
0x14ca   :  { %1600 = vperm.xlu1 %2202, %v1575_v17  }
0x14ce   :  { %1605 = vperm.xlu1 %2202, %v1576_v0  }
0x14d2   :  { %1610 = vperm.xlu1 %2202, %v1577_v36  }
0x1524   :  { %v1550_v38 = vpop.permute.xlu1 %1549 }
0x1525   :  { %v1552_v39 = vadd.f32 %v1550_v38, %v1542_v37 }
0x1527   :  { %2313 = vtanh.f32 %v1552_v39 }
0x1528   :  { %v283_v40 = vpop.permute.xlu1 %282 }
0x1529   :  { %285 = vst.msk [vmem:[#allocation2] sm:$0xff] %vm181_vm3, %v283_v40 }
0x152c   :  { %v496_v44 = vpop.permute.xlu1 %495 }
0x152d   :  { %498 = vst.msk [vmem:[#allocation2 + $0x8] sm:$0xff] %vm181_vm3, %v496_v44 }
0x1530   :  { %v1564_v46 = vld [vmem:[#allocation2] sm:$0xff] }
0x1534   :  { %v2314_v26 = vpop.eup %2313 }
0x1535   :  { %1555 = vrot.lane.b32.xlu0 %v2314_v26, %s2319_s27 }
0x1539   :  { %1580 = vperm.xlu0 %2201, %v1571_v28   ;;  %v1586_v32 = vpop.permute.xlu1 %1585 }
0x153d   :  { %708 = vrot.lane.b32.xlu0 %v2699_v56, %s2320_s3  ;;  %v1565_v56 = vld [vmem:[#allocation2 + $0x8] sm:$0xff] }
0x1541   :  { %921 = vrot.lane.b32.xlu0 %v2760_v49, %s2320_s3  ;;  %v1591_v49 = vpop.permute.xlu1 %1590 }
0x1545   :  { %1134 = vrot.lane.b32.xlu0 %v2821_v35, %s2320_s3  ;;  %v1614_v35 = vmul.f32 %v1586_v32, %v1565_v56  ;;  %v1596_v50 = vpop.permute.xlu1 %1595 }
0x1549   :  { %1347 = vrot.lane.b32.xlu0 %v2865_v63, %s2320_s3  ;;  %v1601_v57 = vpop.permute.xlu1 %1600 }
0x154d   :  { %v1606_v4 = vpop.permute.xlu1 %1605 }
0x1551   :  { %v1611_v59 = vpop.permute.xlu1 %1610 }
0x15a7   :  { %v1556_v30 = vpop.permute.xlu0 %1555 }
0x15a8   :  { %v1558_v45 = vmul.f32 %v2312_v22, %v1556_v30 }
0x15aa   :  { %1560 = vrot.lane.b32.xlu0 %v1558_v45, %s2320_s3 }
0x15b4   :  { %v1581_v33 = vpop.permute.xlu0 %1580 }
0x15b5   :  { %v1613_v34 = vmul.f32 %v1581_v33, %v1564_v46 }
0x15b7   :  { %2173 = vmatmul.mubr.msk.f32.vlgmr.msra.gmra.mxu0 %vm181_vm3, %v1613_v34 }
0x15b8   :  { %v709_v47 = vpop.permute.xlu0 %708  ;;  %2175 = vmatprep.mubr.msk.f32.mxu0 %vm2317_vm0, %v2316_v1 }
0x15b9   :  { %711 = vst.msk [vmem:[#allocation2 + $0x10] sm:$0xff] %vm181_vm3, %v709_v47 }
0x15bb   :  { %2176 = vmatmul.mubr.msk.f32.gmra.mxu0 %vm181_vm3, %v1614_v35 }
0x15bc   :  { %v922_v48 = vpop.permute.xlu0 %921  ;;  %2178 = vmatprep.mubr.msk.f32.mxu0 %vm2317_vm0, %v2316_v1 }
0x15bd   :  { %924 = vst.msk [vmem:[#allocation2 + $0x18] sm:$0xff] %vm181_vm3, %v922_v48 }
0x15c0   :  { %v1566_v51 = vld [vmem:[#allocation2 + $0x10] sm:$0xff]  ;;  %v1135_v52 = vpop.permute.xlu0 %1134 }
0x15c1   :  { %v1615_v53 = vmul.f32 %v1591_v49, %v1566_v51  ;;  %1137 = vst.msk [vmem:[#allocation2 + $0x20] sm:$0xff] %vm181_vm3, %v1135_v52 }
0x15c3   :  { %2179 = vmatmul.mubr.msk.f32.gmra.mxu0 %vm181_vm3, %v1615_v53 }
0x15c4   :  { %v1567_v54 = vld [vmem:[#allocation2 + $0x18] sm:$0xff]  ;;  %v1348_v55 = vpop.permute.xlu0 %1347  ;;  %2181 = vmatprep.mubr.msk.f32.mxu0 %vm2317_vm0, %v2316_v1 }
0x15c5   :  { %v1616_v58 = vmul.f32 %v1596_v50, %v1567_v54  ;;  %1350 = vst.msk [vmem:[#allocation2 + $0x28] sm:$0xff] %vm181_vm3, %v1348_v55 }
0x15c7   :  { %2182 = vmatmul.mubr.msk.f32.gmra.mxu0 %vm181_vm3, %v1616_v58 }
0x15c8   :  { %v1568_v2 = vld [vmem:[#allocation2 + $0x20] sm:$0xff]  ;;  %2184 = vmatprep.mubr.msk.f32.mxu0 %vm2317_vm0, %v2316_v1 }
0x15c9   :  { %v1617_v3 = vmul.f32 %v1601_v57, %v1568_v2 }
0x15cb   :  { %2185 = vmatmul.mubr.msk.f32.gmra.mxu0 %vm181_vm3, %v1617_v3 }
0x15cc   :  { %v1569_v5 = vld [vmem:[#allocation2 + $0x28] sm:$0xff]  ;;  %2187 = vmatprep.mubr.msk.f32.mxu0 %vm2317_vm0, %v2316_v1 }
0x15cd   :  { %v1618_v6 = vmul.f32 %v1606_v4, %v1569_v5 }
0x15cf   :  { %2188 = vmatmul.mubr.msk.f32.gmra.mxu0 %vm181_vm3, %v1618_v6 }
0x15d0   :  { %2190 = vmatprep.mubr.msk.f32.mxu0 %vm2317_vm0, %v2316_v1 }
0x161c   :  { %v1561_v7 = vpop.permute.xlu0 %1560 }
0x161d   :  { %1563 = vst.msk [vmem:[#allocation2 + $0x30] sm:$0xff] %vm181_vm3, %v1561_v7 }
0x1624   :  { %v1570_v60 = vld [vmem:[#allocation2 + $0x30] sm:$0xff] }
0x1625   :  { %v1619_v61 = vmul.f32 %v1611_v59, %v1570_v60 }
0x1627   :  { %2191 = vmatmul.mubr.msk.f32.gmra.mxu0 %vm181_vm3, %v1619_v61 }
0x1677   :  { %v1713_v63 = vpop.f32.mrf.mxu0 }
0x1678   :  { %v1714_v8 = vadd.f32 %v1795_v62, %v1713_v63 }
0x1679   :  { %v2174_v9 = vpop.f32.mrf.mxu0 }
0x167a   :  { %1747 = vst [vmem:[%s2984_s9] sm:$0xff] %v1714_v8 }
0x167b   :  { %v1718_v1 = vpop.f32.mrf.mxu0 }
0x167c   :  { %v1719_v10 = vadd.f32 %v1795_v62, %v1718_v1 }
0x167d   :  { %v2177_v12 = vpop.f32.mrf.mxu0 }
0x167e   :  { %1748 = vst [vmem:[%s2984_s9 + $0x8] sm:$0xff] %v1719_v10 }
0x1683   :  { %v1723_v11 = vpop.f32.mrf.mxu0 }
0x1684   :  { %v1724_v13 = vadd.f32 %v1795_v62, %v1723_v11 }
0x1685   :  { %v2180_v14 = vpop.f32.mrf.mxu0 }
0x1686   :  { %1749 = vst [vmem:[%s2984_s9 + $0x10] sm:$0xff] %v1724_v13 }
0x1687   :  { %v1728_v15 = vpop.f32.mrf.mxu0 }
0x1688   :  { %v1729_v16 = vadd.f32 %v1795_v62, %v1728_v15 }
0x1689   :  { %v2183_v18 = vpop.f32.mrf.mxu0 }
0x168a   :  { %1750 = vst [vmem:[%s2984_s9 + $0x18] sm:$0xff] %v1729_v16 }
0x168b   :  { %v1733_v19 = vpop.f32.mrf.mxu0 }
0x168c   :  { %v1734_v20 = vadd.f32 %v1795_v62, %v1733_v19 }
0x168d   :  { %v2186_v21 = vpop.f32.mrf.mxu0 }
0x168e   :  { %1751 = vst [vmem:[%s2984_s9 + $0x20] sm:$0xff] %v1734_v20 }
0x168f   :  { %v1738_v22 = vpop.f32.mrf.mxu0 }
0x1690   :  { %v1739_v23 = vadd.f32 %v1795_v62, %v1738_v22 }
0x1691   :  { %v2189_v24 = vpop.f32.mrf.mxu0 }
0x1692   :  { %1752 = vst [vmem:[%s2984_s9 + $0x28] sm:$0xff] %v1739_v23 }
0x16e7   :  { %v1743_v43 = vpop.f32.mrf.mxu0 }
0x16e8   :  { %v1744_v29 = vadd.f32 %v1795_v62, %v1743_v43 }
0x16e9   :  { %v2192_v31 = vpop.f32.mrf.mxu0 }
0x16ea   :  { %1753 = vst [vmem:[%s2984_s9 + $0x30] sm:$0xff] %v1744_v29 }

</bundles_post_ra>
